<compile_context>
chip_gen: v7x
topology: tpu7x:2x2x1
jax: 0.10.0
libtpu: 0.0.40
codegen_flags: <defaults>
</compile_context>

<pallas_src>
import functools

import jax
import jax.numpy as jnp
from jax import lax
from jax.experimental import pallas as pl
from jax.experimental.pallas import tpu as pltpu

SIZES = (5, 9, 13)
_PAD_SENTINEL = -1_000_000   # row/col value for lane-padding positions


def _spp_kernel(row_ref, col_ref, x_ref, o_ref, *, w, incs, out_slots,
                identity_slot):
  """One (batch, channel-tile) grid step: writes all pooled groups + identity.

  row_ref: (1, HWP) int32  -- row index of every flat spatial position
                              (_PAD_SENTINEL in the lane-padding region).
  col_ref: (1, HWP) int32  -- column index (same sentinel convention).
  x_ref:   (1, TC, HWP)    -- input channel tile, spatial dims flattened.
  o_ref:   (1, G, TC, HWP) -- G = len(sizes) + 1 output groups.
  """
  x = x_ref[0]                                      # (TC, HWP)
  _, hwp = x.shape
  max_pad = max(k // 2 for k in incs)

  rows = row_ref[...]                               # (1, HWP)
  cols = col_ref[...]

  # Shift "taps" = (roll amount, validity mask).  Masks are (1, HWP) and are
  # broadcast across the channel (sublane) axis by jnp.where.  They are built
  # by rolling the index rows with the same shift as the data, so they stay
  # correct whichever direction the HW rotate uses, and the pad sentinels
  # guarantee no valid output ever reads a lane-padding position.
  h_taps, w_taps = [], []
  for d in range(1, max_pad + 1):
    row_pair, col_pair = [], []
    for s in (d * w, hwp - d * w):                  # +/- d rows (flat offset)
      r_s = pltpu.roll(rows, shift=s, axis=1)
      c_s = pltpu.roll(cols, shift=s, axis=1)
      row_pair.append((s, (jnp.abs(r_s - rows) == d) & (c_s == cols)))
    for s in (d, hwp - d):                          # +/- d columns
      r_s = pltpu.roll(rows, shift=s, axis=1)
      c_s = pltpu.roll(cols, shift=s, axis=1)
      col_pair.append((s, (r_s == rows) & (jnp.abs(c_s - cols) == d)))
    h_taps.append(row_pair)
    w_taps.append(col_pair)

  def pool_same(v, k):
    """k x k max pool, stride 1, padding k//2 (edge-clamped), separable."""
    pad = k // 2
    r = v                                           # pool along H (rows)
    for d in range(1, pad + 1):
      for s, m in h_taps[d - 1]:
        r = jnp.where(m, jnp.maximum(r, pltpu.roll(v, shift=s, axis=1)), r)
    o = r                                           # then along W (cols)
    for d in range(1, pad + 1):
      for s, m in w_taps[d - 1]:
        o = jnp.where(m, jnp.maximum(o, pltpu.roll(r, shift=s, axis=1)), o)
    return o

  cur = x
  for inc, slot in zip(incs, out_slots):            # SPPF cascade
    cur = pool_same(cur, inc)
    o_ref[0, slot] = cur
  o_ref[0, identity_slot] = x


def _vmem_capacity_bytes():
  """Physical VMEM per TensorCore; falls back to 128 MiB if the query fails."""
  try:
    cap = getattr(pltpu.get_tpu_info(), "vmem_capacity_bytes", None)
    if cap:
      return int(cap)
  except Exception:
    pass
  return 128 * 1024 * 1024


def _sublane_multiple(itemsize):
  """Sublane packing granularity: 8 (f32), 16 (bf16), 32 (int8)."""
  return 8 * max(1, 4 // itemsize)


def _pick_c_tile(c, per_ch_bytes, itemsize, budget_bytes, min_tiles=1):
  """Largest legal channel tile whose pipelined footprint fits the budget.

  Legal = tc == c, or tc is a multiple of the dtype sublane granularity.
  If no aligned divisor of c fits, fall back to the largest aligned tile and
  let the wrapper use a cdiv grid (Pallas masks the tail block) instead of
  silently blowing the VMEM budget with tc == c.
  """
  sub = _sublane_multiple(itemsize)
  max_tc = max(1, budget_bytes // per_ch_bytes)
  if min_tiles > 1:
    max_tc = min(max_tc, pl.cdiv(c, min_tiles))
  if c <= max_tc and min_tiles <= 1:
    return c
  if c < 2 * sub:
    return c                         # cannot split into legal smaller tiles
  hi = max(sub, (min(c, max_tc) // sub) * sub)
  for t in range(hi, 0, -sub):       # prefer an aligned divisor (no tail)
    if c % t == 0:
      return t
  return hi                          # largest aligned tile; cdiv grid + tail


def spp(x, sizes=SIZES, *, c_tile=None, vmem_limit_bytes=None, pad_lanes=None,
        io_dtype=None):
  """SPP forward.  x: (N, C, H, W) -> (N, (len(sizes)+1)*C, H, W).

  pad_lanes: pad the flattened H*W axis to a multiple of 128 so stores are
    lane-dense (default: only when H*W % 128 != 0).  On HBM-bound chips (v5e)
    callers may set it to False to avoid the padded writeback + crop.
  io_dtype: optional cast (e.g. jnp.bfloat16) to halve HBM traffic on
    bandwidth-bound chips; output is returned in that dtype.
  """
  if io_dtype is not None:
    x = x.astype(io_dtype)
  n, c, h, w = x.shape
  hw = h * w

  sizes = tuple(int(k) for k in sizes)
  if len(set(sizes)) != len(sizes) or any(k % 2 == 0 or k < 3 for k in sizes):
    raise ValueError("sizes must be distinct odd ints >= 3")
  order = sizes[::-1]                  # PyTorch applies sizes[::-1], then x
  asc = tuple(sorted(sizes))
  incs, prev = [], 1
  for k in asc:                        # cascade increments: (5, 5, 5) for SPP
    inc = k - prev + 1
    if inc % 2 != 1:
      raise ValueError("cascade requires even gaps between successive sizes")
    incs.append(inc)
    prev = k
  out_slots = tuple(order.index(k) for k in asc)
  groups = len(sizes) + 1
  max_pad = max(k // 2 for k in incs)
  if h < 2 * max_pad + 1 or w < 2 * max_pad + 1:
    raise ValueError("spatial dims too small for the rolled-window kernel")

  # Lane-dense flattened spatial axis.
  if pad_lanes is None:
    pad_lanes = (hw % 128) != 0
  hwp = pl.cdiv(hw, 128) * 128 if pad_lanes else hw

  # VMEM budget / scoped limit derived from the actual chip (v5e/v6e: 128 MiB,
  # v7x: 64 MiB per TensorCore), so one code path serves all generations.
  cap = _vmem_capacity_bytes()
  if vmem_limit_bytes is None:
    vmem_limit_bytes = cap // 2        # 64 MiB on v5e/v6e, 32 MiB on v7x
  budget = cap // 3                    # working-set target (in + out + temps)

  itemsize = x.dtype.itemsize
  sub = _sublane_multiple(itemsize)
  # Double-buffered input + double-buffered (groups)x output blocks plus ~6
  # live full-tile temporaries inside the cascade (masks are (1, HWP) now and
  # no longer counted per channel).
  per_ch = (2 * (1 + groups) + 6) * hwp * itemsize
  min_tiles = 2 if n == 1 else 1       # keep both v7x TensorCores busy
  if c_tile is not None:
    tc = int(c_tile)
    if tc != c and tc % sub != 0:
      raise ValueError(f"c_tile must equal C or be a multiple of {sub}")
  else:
    tc = _pick_c_tile(c, per_ch, itemsize, budget, min_tiles)
  grid_c = pl.cdiv(c, tc)

  x_flat = x.reshape(n, c, hw)                              # free reshape
  if hwp != hw:
    x_flat = jnp.pad(x_flat, ((0, 0), (0, 0), (0, hwp - hw)))

  flat = jnp.arange(hwp, dtype=jnp.int32)
  valid = flat < hw
  rows = jnp.where(valid, flat // w, jnp.int32(_PAD_SENTINEL)).reshape(1, hwp)
  cols = jnp.where(valid, flat % w, jnp.int32(_PAD_SENTINEL)).reshape(1, hwp)

  kernel = functools.partial(
      _spp_kernel, w=w, incs=tuple(incs), out_slots=out_slots,
      identity_slot=len(sizes))

  out = pl.pallas_call(
      kernel,
      out_shape=jax.ShapeDtypeStruct((n, groups, c, hwp), x.dtype),
      grid=(n, grid_c),
      in_specs=[
          pl.BlockSpec((1, hwp), lambda b, ci: (0, 0)),          # row ids
          pl.BlockSpec((1, hwp), lambda b, ci: (0, 0)),          # col ids
          pl.BlockSpec((1, tc, hwp), lambda b, ci: (b, ci, 0)),  # input tile
      ],
      out_specs=pl.BlockSpec((1, groups, tc, hwp), lambda b, ci: (b, 0, ci, 0)),
      compiler_params=pltpu.CompilerParams(
          dimension_semantics=("parallel", "parallel"),
          vmem_limit_bytes=vmem_limit_bytes),
  )(rows, cols, x_flat)

  if hwp != hw:
    out = out[..., :hw]
  return out.reshape(n, groups * c, h, w)          # free when hwp == hw


def _spp_reference(x, sizes=SIZES):
  """Pure-JAX reference using lax.reduce_window (matches PyTorch MaxPool2d)."""
  pools = []
  for k in sizes[::-1]:
    pad = k // 2
    pools.append(lax.reduce_window(
        x, -jnp.inf, lax.max,
        window_dimensions=(1, 1, k, k),
        window_strides=(1, 1, 1, 1),
        padding=((0, 0), (0, 0), (pad, pad), (pad, pad))))
  pools.append(x)
  return jnp.concatenate(pools, axis=1)


if __name__ == "__main__":
  key = jax.random.PRNGKey(0)
  k1, k2 = jax.random.split(key)

  # Lane-aligned fast path (H*W = 256 is a multiple of 128).
  x = jax.random.normal(k1, (2, 4, 16, 16), dtype=jnp.float32)
  out = jax.block_until_ready(jax.jit(spp)(x))
  ref = _spp_reference(x)
  assert out.shape == ref.shape == (2, 16, 16, 16), out.shape
  assert jnp.allclose(out, ref), "mismatch vs reference (aligned path)"

  # Lane-padded path (13*13 = 169 padded to 256 inside the kernel, cropped).
  x2 = jax.random.normal(k2, (1, 8, 13, 13), dtype=jnp.float32)
  out2 = jax.block_until_ready(jax.jit(spp)(x2))
  ref2 = _spp_reference(x2)
  assert out2.shape == ref2.shape == (1, 32, 13, 13), out2.shape
  assert jnp.allclose(out2, ref2), "mismatch vs reference (padded path)"

  print("KERNEL_OK")
</pallas_src>

<mosaic_0001>
module attributes {stable_mosaic.version = 11 : i64} {
  func.func @_spp_kernel(%arg0: i32, %arg1: i32, %arg2: memref<1x256xi32, #tpu.memory_space<vmem>>, %arg3: memref<1x256xi32, #tpu.memory_space<vmem>>, %arg4: memref<1x4x256xf32, #tpu.memory_space<vmem>>, %arg5: memref<1x4x4x256xf32, #tpu.memory_space<vmem>>) attributes {dimension_semantics = [#tpu.dimension_semantics<parallel>, #tpu.dimension_semantics<parallel>], iteration_bounds = array<i64: 2, 1>, scalar_prefetch = 0 : i64, scratch_operands = 0 : i64, tpu.core_type = #tpu.core_type<tc>, window_params = [{pipeline_mode = #tpu.pipeline_mode<synchronous>, transform_indices = @transform_0, window_bounds = array<i64: 1, 256>}, {pipeline_mode = #tpu.pipeline_mode<synchronous>, transform_indices = @transform_1, window_bounds = array<i64: 1, 256>}, {transform_indices = @transform_2, window_bounds = array<i64: 1, 4, 256>}, {transform_indices = @transform_3, window_bounds = array<i64: 1, 4, 4, 256>}]} {
    %c0 = arith.constant 0 : index
    %c0_0 = arith.constant 0 : index
    %c0_1 = arith.constant 0 : index
    %0 = vector.load %arg4[%c0, %c0_0, %c0_1] : memref<1x4x256xf32, #tpu.memory_space<vmem>>, vector<1x4x256xf32>
    %1 = vector.shape_cast %0 : vector<1x4x256xf32> to vector<4x256xf32>
    %c0_2 = arith.constant 0 : index
    %c0_3 = arith.constant 0 : index
    %2 = vector.load %arg2[%c0_2, %c0_3] : memref<1x256xi32, #tpu.memory_space<vmem>>, vector<1x256xi32>
    %c0_4 = arith.constant 0 : index
    %c0_5 = arith.constant 0 : index
    %3 = vector.load %arg3[%c0_4, %c0_5] : memref<1x256xi32, #tpu.memory_space<vmem>>, vector<1x256xi32>
    %c16_i32 = arith.constant 16 : i32
    %4 = tpu.dynamic_rotate %2 by %c16_i32 dim 1 : vector<1x256xi32>, i32 -> vector<1x256xi32>
    %c16_i32_6 = arith.constant 16 : i32
    %5 = tpu.dynamic_rotate %3 by %c16_i32_6 dim 1 : vector<1x256xi32>, i32 -> vector<1x256xi32>
    %6 = arith.subi %4, %2 : vector<1x256xi32>
    %7 = math.absi %6 : vector<1x256xi32>
    %c1_i32 = arith.constant 1 : i32
    %8 = vector.broadcast %c1_i32 : i32 to vector<1x256xi32>
    %9 = arith.cmpi eq, %7, %8 : vector<1x256xi32>
    %10 = arith.cmpi eq, %5, %3 : vector<1x256xi32>
    %11 = arith.andi %9, %10 : vector<1x256xi1>
    %c240_i32 = arith.constant 240 : i32
    %12 = tpu.dynamic_rotate %2 by %c240_i32 dim 1 : vector<1x256xi32>, i32 -> vector<1x256xi32>
    %c240_i32_7 = arith.constant 240 : i32
    %13 = tpu.dynamic_rotate %3 by %c240_i32_7 dim 1 : vector<1x256xi32>, i32 -> vector<1x256xi32>
    %14 = arith.subi %12, %2 : vector<1x256xi32>
    %15 = math.absi %14 : vector<1x256xi32>
    %c1_i32_8 = arith.constant 1 : i32
    %16 = vector.broadcast %c1_i32_8 : i32 to vector<1x256xi32>
    %17 = arith.cmpi eq, %15, %16 : vector<1x256xi32>
    %18 = arith.cmpi eq, %13, %3 : vector<1x256xi32>
    %19 = arith.andi %17, %18 : vector<1x256xi1>
    %c1_i32_9 = arith.constant 1 : i32
    %20 = tpu.dynamic_rotate %2 by %c1_i32_9 dim 1 : vector<1x256xi32>, i32 -> vector<1x256xi32>
    %c1_i32_10 = arith.constant 1 : i32
    %21 = tpu.dynamic_rotate %3 by %c1_i32_10 dim 1 : vector<1x256xi32>, i32 -> vector<1x256xi32>
    %22 = arith.cmpi eq, %20, %2 : vector<1x256xi32>
    %23 = arith.subi %21, %3 : vector<1x256xi32>
    %24 = math.absi %23 : vector<1x256xi32>
    %c1_i32_11 = arith.constant 1 : i32
    %25 = vector.broadcast %c1_i32_11 : i32 to vector<1x256xi32>
    %26 = arith.cmpi eq, %24, %25 : vector<1x256xi32>
    %27 = arith.andi %22, %26 : vector<1x256xi1>
    %c255_i32 = arith.constant 255 : i32
    %28 = tpu.dynamic_rotate %2 by %c255_i32 dim 1 : vector<1x256xi32>, i32 -> vector<1x256xi32>
    %c255_i32_12 = arith.constant 255 : i32
    %29 = tpu.dynamic_rotate %3 by %c255_i32_12 dim 1 : vector<1x256xi32>, i32 -> vector<1x256xi32>
    %30 = arith.cmpi eq, %28, %2 : vector<1x256xi32>
    %31 = arith.subi %29, %3 : vector<1x256xi32>
    %32 = math.absi %31 : vector<1x256xi32>
    %c1_i32_13 = arith.constant 1 : i32
    %33 = vector.broadcast %c1_i32_13 : i32 to vector<1x256xi32>
    %34 = arith.cmpi eq, %32, %33 : vector<1x256xi32>
    %35 = arith.andi %30, %34 : vector<1x256xi1>
    %c32_i32 = arith.constant 32 : i32
    %36 = tpu.dynamic_rotate %2 by %c32_i32 dim 1 : vector<1x256xi32>, i32 -> vector<1x256xi32>
    %c32_i32_14 = arith.constant 32 : i32
    %37 = tpu.dynamic_rotate %3 by %c32_i32_14 dim 1 : vector<1x256xi32>, i32 -> vector<1x256xi32>
    %38 = arith.subi %36, %2 : vector<1x256xi32>
    %39 = math.absi %38 : vector<1x256xi32>
    %c2_i32 = arith.constant 2 : i32
    %40 = vector.broadcast %c2_i32 : i32 to vector<1x256xi32>
    %41 = arith.cmpi eq, %39, %40 : vector<1x256xi32>
    %42 = arith.cmpi eq, %37, %3 : vector<1x256xi32>
    %43 = arith.andi %41, %42 : vector<1x256xi1>
    %c224_i32 = arith.constant 224 : i32
    %44 = tpu.dynamic_rotate %2 by %c224_i32 dim 1 : vector<1x256xi32>, i32 -> vector<1x256xi32>
    %c224_i32_15 = arith.constant 224 : i32
    %45 = tpu.dynamic_rotate %3 by %c224_i32_15 dim 1 : vector<1x256xi32>, i32 -> vector<1x256xi32>
    %46 = arith.subi %44, %2 : vector<1x256xi32>
    %47 = math.absi %46 : vector<1x256xi32>
    %c2_i32_16 = arith.constant 2 : i32
    %48 = vector.broadcast %c2_i32_16 : i32 to vector<1x256xi32>
    %49 = arith.cmpi eq, %47, %48 : vector<1x256xi32>
    %50 = arith.cmpi eq, %45, %3 : vector<1x256xi32>
    %51 = arith.andi %49, %50 : vector<1x256xi1>
    %c2_i32_17 = arith.constant 2 : i32
    %52 = tpu.dynamic_rotate %2 by %c2_i32_17 dim 1 : vector<1x256xi32>, i32 -> vector<1x256xi32>
    %c2_i32_18 = arith.constant 2 : i32
    %53 = tpu.dynamic_rotate %3 by %c2_i32_18 dim 1 : vector<1x256xi32>, i32 -> vector<1x256xi32>
    %54 = arith.cmpi eq, %52, %2 : vector<1x256xi32>
    %55 = arith.subi %53, %3 : vector<1x256xi32>
    %56 = math.absi %55 : vector<1x256xi32>
    %c2_i32_19 = arith.constant 2 : i32
    %57 = vector.broadcast %c2_i32_19 : i32 to vector<1x256xi32>
    %58 = arith.cmpi eq, %56, %57 : vector<1x256xi32>
    %59 = arith.andi %54, %58 : vector<1x256xi1>
    %c254_i32 = arith.constant 254 : i32
    %60 = tpu.dynamic_rotate %2 by %c254_i32 dim 1 : vector<1x256xi32>, i32 -> vector<1x256xi32>
    %c254_i32_20 = arith.constant 254 : i32
    %61 = tpu.dynamic_rotate %3 by %c254_i32_20 dim 1 : vector<1x256xi32>, i32 -> vector<1x256xi32>
    %62 = arith.cmpi eq, %60, %2 : vector<1x256xi32>
    %63 = arith.subi %61, %3 : vector<1x256xi32>
    %64 = math.absi %63 : vector<1x256xi32>
    %c2_i32_21 = arith.constant 2 : i32
    %65 = vector.broadcast %c2_i32_21 : i32 to vector<1x256xi32>
    %66 = arith.cmpi eq, %64, %65 : vector<1x256xi32>
    %67 = arith.andi %62, %66 : vector<1x256xi1>
    %c16_i32_22 = arith.constant 16 : i32
    %68 = tpu.dynamic_rotate %1 by %c16_i32_22 dim 1 : vector<4x256xf32>, i32 -> vector<4x256xf32>
    %69 = arith.maximumf %1, %68 : vector<4x256xf32>
    %70 = vector.shape_cast %11 : vector<1x256xi1> to vector<1x256xi1>
    %71 = vector.broadcast %70 : vector<1x256xi1> to vector<4x256xi1>
    %72 = arith.select %71, %69, %1 : vector<4x256xi1>, vector<4x256xf32>
    %c240_i32_23 = arith.constant 240 : i32
    %73 = tpu.dynamic_rotate %1 by %c240_i32_23 dim 1 : vector<4x256xf32>, i32 -> vector<4x256xf32>
    %74 = arith.maximumf %72, %73 : vector<4x256xf32>
    %75 = vector.shape_cast %19 : vector<1x256xi1> to vector<1x256xi1>
    %76 = vector.broadcast %75 : vector<1x256xi1> to vector<4x256xi1>
    %77 = arith.select %76, %74, %72 : vector<4x256xi1>, vector<4x256xf32>
    %c32_i32_24 = arith.constant 32 : i32
    %78 = tpu.dynamic_rotate %1 by %c32_i32_24 dim 1 : vector<4x256xf32>, i32 -> vector<4x256xf32>
    %79 = arith.maximumf %77, %78 : vector<4x256xf32>
    %80 = vector.shape_cast %43 : vector<1x256xi1> to vector<1x256xi1>
    %81 = vector.broadcast %80 : vector<1x256xi1> to vector<4x256xi1>
    %82 = arith.select %81, %79, %77 : vector<4x256xi1>, vector<4x256xf32>
    %c224_i32_25 = arith.constant 224 : i32
    %83 = tpu.dynamic_rotate %1 by %c224_i32_25 dim 1 : vector<4x256xf32>, i32 -> vector<4x256xf32>
    %84 = arith.maximumf %82, %83 : vector<4x256xf32>
    %85 = vector.shape_cast %51 : vector<1x256xi1> to vector<1x256xi1>
    %86 = vector.broadcast %85 : vector<1x256xi1> to vector<4x256xi1>
    %87 = arith.select %86, %84, %82 : vector<4x256xi1>, vector<4x256xf32>
    %c1_i32_26 = arith.constant 1 : i32
    %88 = tpu.dynamic_rotate %87 by %c1_i32_26 dim 1 : vector<4x256xf32>, i32 -> vector<4x256xf32>
    %89 = arith.maximumf %87, %88 : vector<4x256xf32>
    %90 = vector.shape_cast %27 : vector<1x256xi1> to vector<1x256xi1>
    %91 = vector.broadcast %90 : vector<1x256xi1> to vector<4x256xi1>
    %92 = arith.select %91, %89, %87 : vector<4x256xi1>, vector<4x256xf32>
    %c255_i32_27 = arith.constant 255 : i32
    %93 = tpu.dynamic_rotate %87 by %c255_i32_27 dim 1 : vector<4x256xf32>, i32 -> vector<4x256xf32>
    %94 = arith.maximumf %92, %93 : vector<4x256xf32>
    %95 = vector.shape_cast %35 : vector<1x256xi1> to vector<1x256xi1>
    %96 = vector.broadcast %95 : vector<1x256xi1> to vector<4x256xi1>
    %97 = arith.select %96, %94, %92 : vector<4x256xi1>, vector<4x256xf32>
    %c2_i32_28 = arith.constant 2 : i32
    %98 = tpu.dynamic_rotate %87 by %c2_i32_28 dim 1 : vector<4x256xf32>, i32 -> vector<4x256xf32>
    %99 = arith.maximumf %97, %98 : vector<4x256xf32>
    %100 = vector.shape_cast %59 : vector<1x256xi1> to vector<1x256xi1>
    %101 = vector.broadcast %100 : vector<1x256xi1> to vector<4x256xi1>
    %102 = arith.select %101, %99, %97 : vector<4x256xi1>, vector<4x256xf32>
    %c254_i32_29 = arith.constant 254 : i32
    %103 = tpu.dynamic_rotate %87 by %c254_i32_29 dim 1 : vector<4x256xf32>, i32 -> vector<4x256xf32>
    %104 = arith.maximumf %102, %103 : vector<4x256xf32>
    %105 = vector.shape_cast %67 : vector<1x256xi1> to vector<1x256xi1>
    %106 = vector.broadcast %105 : vector<1x256xi1> to vector<4x256xi1>
    %107 = arith.select %106, %104, %102 : vector<4x256xi1>, vector<4x256xf32>
    %c0_30 = arith.constant 0 : index
    %c2 = arith.constant 2 : index
    %c0_31 = arith.constant 0 : index
    %c0_32 = arith.constant 0 : index
    %108 = vector.load %arg5[%c0_30, %c2, %c0_31, %c0_32] : memref<1x4x4x256xf32, #tpu.memory_space<vmem>>, vector<1x1x4x256xf32>
    %109 = vector.shape_cast %108 : vector<1x1x4x256xf32> to vector<4x256xf32>
    %110 = vector.shape_cast %107 : vector<4x256xf32> to vector<1x1x4x256xf32>
    tpu.vector_store %arg5[%c0_30, %c2, %c0_31, %c0_32], %110 {strides = array<i32>} : memref<1x4x4x256xf32, #tpu.memory_space<vmem>>, vector<1x1x4x256xf32>,
    %c16_i32_33 = arith.constant 16 : i32
    %111 = tpu.dynamic_rotate %107 by %c16_i32_33 dim 1 : vector<4x256xf32>, i32 -> vector<4x256xf32>
    %112 = arith.maximumf %107, %111 : vector<4x256xf32>
    %113 = vector.shape_cast %11 : vector<1x256xi1> to vector<1x256xi1>
    %114 = vector.broadcast %113 : vector<1x256xi1> to vector<4x256xi1>
    %115 = arith.select %114, %112, %107 : vector<4x256xi1>, vector<4x256xf32>
    %c240_i32_34 = arith.constant 240 : i32
    %116 = tpu.dynamic_rotate %107 by %c240_i32_34 dim 1 : vector<4x256xf32>, i32 -> vector<4x256xf32>
    %117 = arith.maximumf %115, %116 : vector<4x256xf32>
    %118 = vector.shape_cast %19 : vector<1x256xi1> to vector<1x256xi1>
    %119 = vector.broadcast %118 : vector<1x256xi1> to vector<4x256xi1>
    %120 = arith.select %119, %117, %115 : vector<4x256xi1>, vector<4x256xf32>
    %c32_i32_35 = arith.constant 32 : i32
    %121 = tpu.dynamic_rotate %107 by %c32_i32_35 dim 1 : vector<4x256xf32>, i32 -> vector<4x256xf32>
    %122 = arith.maximumf %120, %121 : vector<4x256xf32>
    %123 = vector.shape_cast %43 : vector<1x256xi1> to vector<1x256xi1>
    %124 = vector.broadcast %123 : vector<1x256xi1> to vector<4x256xi1>
    %125 = arith.select %124, %122, %120 : vector<4x256xi1>, vector<4x256xf32>
    %c224_i32_36 = arith.constant 224 : i32
    %126 = tpu.dynamic_rotate %107 by %c224_i32_36 dim 1 : vector<4x256xf32>, i32 -> vector<4x256xf32>
    %127 = arith.maximumf %125, %126 : vector<4x256xf32>
    %128 = vector.shape_cast %51 : vector<1x256xi1> to vector<1x256xi1>
    %129 = vector.broadcast %128 : vector<1x256xi1> to vector<4x256xi1>
    %130 = arith.select %129, %127, %125 : vector<4x256xi1>, vector<4x256xf32>
    %c1_i32_37 = arith.constant 1 : i32
    %131 = tpu.dynamic_rotate %130 by %c1_i32_37 dim 1 : vector<4x256xf32>, i32 -> vector<4x256xf32>
    %132 = arith.maximumf %130, %131 : vector<4x256xf32>
    %133 = vector.shape_cast %27 : vector<1x256xi1> to vector<1x256xi1>
    %134 = vector.broadcast %133 : vector<1x256xi1> to vector<4x256xi1>
    %135 = arith.select %134, %132, %130 : vector<4x256xi1>, vector<4x256xf32>
    %c255_i32_38 = arith.constant 255 : i32
    %136 = tpu.dynamic_rotate %130 by %c255_i32_38 dim 1 : vector<4x256xf32>, i32 -> vector<4x256xf32>
    %137 = arith.maximumf %135, %136 : vector<4x256xf32>
    %138 = vector.shape_cast %35 : vector<1x256xi1> to vector<1x256xi1>
    %139 = vector.broadcast %138 : vector<1x256xi1> to vector<4x256xi1>
    %140 = arith.select %139, %137, %135 : vector<4x256xi1>, vector<4x256xf32>
    %c2_i32_39 = arith.constant 2 : i32
    %141 = tpu.dynamic_rotate %130 by %c2_i32_39 dim 1 : vector<4x256xf32>, i32 -> vector<4x256xf32>
    %142 = arith.maximumf %140, %141 : vector<4x256xf32>
    %143 = vector.shape_cast %59 : vector<1x256xi1> to vector<1x256xi1>
    %144 = vector.broadcast %143 : vector<1x256xi1> to vector<4x256xi1>
    %145 = arith.select %144, %142, %140 : vector<4x256xi1>, vector<4x256xf32>
    %c254_i32_40 = arith.constant 254 : i32
    %146 = tpu.dynamic_rotate %130 by %c254_i32_40 dim 1 : vector<4x256xf32>, i32 -> vector<4x256xf32>
    %147 = arith.maximumf %145, %146 : vector<4x256xf32>
    %148 = vector.shape_cast %67 : vector<1x256xi1> to vector<1x256xi1>
    %149 = vector.broadcast %148 : vector<1x256xi1> to vector<4x256xi1>
    %150 = arith.select %149, %147, %145 : vector<4x256xi1>, vector<4x256xf32>
    %c0_41 = arith.constant 0 : index
    %c1 = arith.constant 1 : index
    %c0_42 = arith.constant 0 : index
    %c0_43 = arith.constant 0 : index
    %151 = vector.load %arg5[%c0_41, %c1, %c0_42, %c0_43] : memref<1x4x4x256xf32, #tpu.memory_space<vmem>>, vector<1x1x4x256xf32>
    %152 = vector.shape_cast %151 : vector<1x1x4x256xf32> to vector<4x256xf32>
    %153 = vector.shape_cast %150 : vector<4x256xf32> to vector<1x1x4x256xf32>
    tpu.vector_store %arg5[%c0_41, %c1, %c0_42, %c0_43], %153 {strides = array<i32>} : memref<1x4x4x256xf32, #tpu.memory_space<vmem>>, vector<1x1x4x256xf32>,
    %c16_i32_44 = arith.constant 16 : i32
    %154 = tpu.dynamic_rotate %150 by %c16_i32_44 dim 1 : vector<4x256xf32>, i32 -> vector<4x256xf32>
    %155 = arith.maximumf %150, %154 : vector<4x256xf32>
    %156 = vector.shape_cast %11 : vector<1x256xi1> to vector<1x256xi1>
    %157 = vector.broadcast %156 : vector<1x256xi1> to vector<4x256xi1>
    %158 = arith.select %157, %155, %150 : vector<4x256xi1>, vector<4x256xf32>
    %c240_i32_45 = arith.constant 240 : i32
    %159 = tpu.dynamic_rotate %150 by %c240_i32_45 dim 1 : vector<4x256xf32>, i32 -> vector<4x256xf32>
    %160 = arith.maximumf %158, %159 : vector<4x256xf32>
    %161 = vector.shape_cast %19 : vector<1x256xi1> to vector<1x256xi1>
    %162 = vector.broadcast %161 : vector<1x256xi1> to vector<4x256xi1>
    %163 = arith.select %162, %160, %158 : vector<4x256xi1>, vector<4x256xf32>
    %c32_i32_46 = arith.constant 32 : i32
    %164 = tpu.dynamic_rotate %150 by %c32_i32_46 dim 1 : vector<4x256xf32>, i32 -> vector<4x256xf32>
    %165 = arith.maximumf %163, %164 : vector<4x256xf32>
    %166 = vector.shape_cast %43 : vector<1x256xi1> to vector<1x256xi1>
    %167 = vector.broadcast %166 : vector<1x256xi1> to vector<4x256xi1>
    %168 = arith.select %167, %165, %163 : vector<4x256xi1>, vector<4x256xf32>
    %c224_i32_47 = arith.constant 224 : i32
    %169 = tpu.dynamic_rotate %150 by %c224_i32_47 dim 1 : vector<4x256xf32>, i32 -> vector<4x256xf32>
    %170 = arith.maximumf %168, %169 : vector<4x256xf32>
    %171 = vector.shape_cast %51 : vector<1x256xi1> to vector<1x256xi1>
    %172 = vector.broadcast %171 : vector<1x256xi1> to vector<4x256xi1>
    %173 = arith.select %172, %170, %168 : vector<4x256xi1>, vector<4x256xf32>
    %c1_i32_48 = arith.constant 1 : i32
    %174 = tpu.dynamic_rotate %173 by %c1_i32_48 dim 1 : vector<4x256xf32>, i32 -> vector<4x256xf32>
    %175 = arith.maximumf %173, %174 : vector<4x256xf32>
    %176 = vector.shape_cast %27 : vector<1x256xi1> to vector<1x256xi1>
    %177 = vector.broadcast %176 : vector<1x256xi1> to vector<4x256xi1>
    %178 = arith.select %177, %175, %173 : vector<4x256xi1>, vector<4x256xf32>
    %c255_i32_49 = arith.constant 255 : i32
    %179 = tpu.dynamic_rotate %173 by %c255_i32_49 dim 1 : vector<4x256xf32>, i32 -> vector<4x256xf32>
    %180 = arith.maximumf %178, %179 : vector<4x256xf32>
    %181 = vector.shape_cast %35 : vector<1x256xi1> to vector<1x256xi1>
    %182 = vector.broadcast %181 : vector<1x256xi1> to vector<4x256xi1>
    %183 = arith.select %182, %180, %178 : vector<4x256xi1>, vector<4x256xf32>
    %c2_i32_50 = arith.constant 2 : i32
    %184 = tpu.dynamic_rotate %173 by %c2_i32_50 dim 1 : vector<4x256xf32>, i32 -> vector<4x256xf32>
    %185 = arith.maximumf %183, %184 : vector<4x256xf32>
    %186 = vector.shape_cast %59 : vector<1x256xi1> to vector<1x256xi1>
    %187 = vector.broadcast %186 : vector<1x256xi1> to vector<4x256xi1>
    %188 = arith.select %187, %185, %183 : vector<4x256xi1>, vector<4x256xf32>
    %c254_i32_51 = arith.constant 254 : i32
    %189 = tpu.dynamic_rotate %173 by %c254_i32_51 dim 1 : vector<4x256xf32>, i32 -> vector<4x256xf32>
    %190 = arith.maximumf %188, %189 : vector<4x256xf32>
    %191 = vector.shape_cast %67 : vector<1x256xi1> to vector<1x256xi1>
    %192 = vector.broadcast %191 : vector<1x256xi1> to vector<4x256xi1>
    %193 = arith.select %192, %190, %188 : vector<4x256xi1>, vector<4x256xf32>
    %c0_52 = arith.constant 0 : index
    %c0_53 = arith.constant 0 : index
    %c0_54 = arith.constant 0 : index
    %c0_55 = arith.constant 0 : index
    %194 = vector.load %arg5[%c0_52, %c0_53, %c0_54, %c0_55] : memref<1x4x4x256xf32, #tpu.memory_space<vmem>>, vector<1x1x4x256xf32>
    %195 = vector.shape_cast %194 : vector<1x1x4x256xf32> to vector<4x256xf32>
    %196 = vector.shape_cast %193 : vector<4x256xf32> to vector<1x1x4x256xf32>
    tpu.vector_store %arg5[%c0_52, %c0_53, %c0_54, %c0_55], %196 {strides = array<i32>} : memref<1x4x4x256xf32, #tpu.memory_space<vmem>>, vector<1x1x4x256xf32>,
    %c0_56 = arith.constant 0 : index
    %c3 = arith.constant 3 : index
    %c0_57 = arith.constant 0 : index
    %c0_58 = arith.constant 0 : index
    %197 = vector.load %arg5[%c0_56, %c3, %c0_57, %c0_58] : memref<1x4x4x256xf32, #tpu.memory_space<vmem>>, vector<1x1x4x256xf32>
    %198 = vector.shape_cast %197 : vector<1x1x4x256xf32> to vector<4x256xf32>
    %199 = vector.shape_cast %1 : vector<4x256xf32> to vector<1x1x4x256xf32>
    tpu.vector_store %arg5[%c0_56, %c3, %c0_57, %c0_58], %199 {strides = array<i32>} : memref<1x4x4x256xf32, #tpu.memory_space<vmem>>, vector<1x1x4x256xf32>,
    return
  }
  func.func @transform_0(%arg0: i32, %arg1: i32) -> (i32, i32) {
    %c0_i32 = arith.constant 0 : i32
    %c0_i32_0 = arith.constant 0 : i32
    %c0_i32_1 = arith.constant 0 : i32
    return %c0_i32, %c0_i32_0 : i32, i32
  }
  func.func @transform_1(%arg0: i32, %arg1: i32) -> (i32, i32) {
    %c0_i32 = arith.constant 0 : i32
    %c0_i32_0 = arith.constant 0 : i32
    %c0_i32_1 = arith.constant 0 : i32
    return %c0_i32, %c0_i32_0 : i32, i32
  }
  func.func @transform_2(%arg0: i32, %arg1: i32) -> (i32, i32, i32) {
    %c0_i32 = arith.constant 0 : i32
    %c0_i32_0 = arith.constant 0 : i32
    return %arg0, %arg1, %c0_i32 : i32, i32, i32
  }
  func.func @transform_3(%arg0: i32, %arg1: i32) -> (i32, i32, i32, i32) {
    %c0_i32 = arith.constant 0 : i32
    %c0_i32_0 = arith.constant 0 : i32
    %c0_i32_1 = arith.constant 0 : i32
    return %arg0, %c0_i32, %arg1, %c0_i32_0 : i32, i32, i32, i32
  }
}

</mosaic_0001>

<bundles_post_ra>
// kernel: spp.1
= control target key start
LH: loop header
LB: loop body
LE: loop exit
PB: predicated region body
PF: predicated region fallthrough
CT: control target
= control target key end

     0   :  { %8 = vsyncpa [#allocation3], 0  ;;  %s2111_s0 = inlined_call_operand.hbm [shape: s32[1,256], index: 0, kind: input, shape index: {}]   ;;  %s2112_s1 = inlined_call_operand.hbm [shape: s32[1,256], index: 1, kind: input, shape index: {}]   ;;  %s2113_s2 = inlined_call_operand.hbm [shape: f32[2,4,256], index: 2, kind: input, shape index: {}]   ;;  %s2114_s3 = inlined_call_operand.hbm [shape: f32[2,4,4,256], index: 3, kind: output, shape index: {}]  }
   0x1   :  { %9 = vsyncpa [#allocation6], 0 }
   0x2   :  { %10 = vsyncpa [#allocation4], 0 }
   0x3   :  { %12 = vsyncpa [#allocation4 + $0x1], 0  ;;  %s1299_s12 = smov 0   ;;  %s1301_s13 = smov 0  }
   0x4   :  { %s1303_s14 = smov 0   ;;  %s1305_s15 = smov 0  }
   0x5   :  { %s1307_s16 = smov 0   ;;  %s1309_s17 = smov 0  }
   0x6 LB: > { %s1330_s18 = sadd.s32 4294967295, %s1262_s17   ;;  %s952_s19 = sadd.s32 4294967294, %s1262_s17   ;;  %s1262_s17 = sphi %s1309_s17, %s18_s17   ;;  %s1258_s16 = sphi %s1307_s16, %s2245_s16   ;;  %s1254_s15 = sphi %s1305_s15, %s2244_s15   ;;  %s1250_s14 = sphi %s1303_s14, %s2243_s14   ;;  %s1246_s13 = sphi %s1301_s13, %s2242_s13   ;;  %s1242_s12 = sphi %s1299_s12, %s2241_s12  }
   0x7   : > { %p94_p0 = scmp.ne.s32.totalorder %s1246_s13, %s1242_s12  ;;  %p2115_p1 = scmp.eq.s32.totalorder %s1330_s18, 0 }
   0x8   : > { %p126_p3 = scmp.eq.s32.totalorder %s952_s19, 1  ;;  %p953_p5 = scmp.ge.s32.totalorder %s1262_s17, 1 }
   0x9   : > { %p1339_p4 = por %p2115_p1, %p94_p0  ;;  %p133_p7 = scmp.lt.s32.totalorder %s1262_s17, 3 }
   0xa   : > { %p1344_p6 = por %p126_p3, %p94_p0  ;;  %s1264_s23 = smov [#allocation2]  }
   0xb   : > { %s2138_s20 = scalar_select %p1339_p4, 1, 0 }
   0xc   : > { %s2139_s21 = scalar_select %p1344_p6, 1, 0 }
   0xd   : > { %p1349_p8 = pnand %p953_p5, %p133_p7  ;;  %s146_s24 = sshll.u32 %s1264_s23, 4  ;;  %s147_s24 = int_to_ptr.vmem [resolvable:$true] %s146_s24 }
   0xe   : > { %s1265_s25 = smov [#allocation5]   ;;  %s1086_s30 = scalar_lea.hbm %s2111_s0, 32 }
   0xf   : > { %s2140_s22 = scalar_select %p1349_p8, 1, 0 }
  0x10   : > { %p1003_p10 = pneg %p1349_p8  ;;  %s157_s26 = sshll.u32 %s1265_s25, 4  ;;  %s1362_s26 = int_to_ptr.vmem [resolvable:$true] %s157_s26 }
  0x11   : > { %p1087_p12 = scmp.ne.s32.totalorder %s2111_s0, %s1086_s30  ;;  %p1093_p5 = scmp.lt.u32.totalorder %s1086_s30, %s2111_s0 }
  0x12   : > { %p1358_p11 = pnand %p1003_p10, %p2115_p1 }
  0x14   : > { %p1088_p13 = pneg %p1358_p11 }
  0x16   : > { %p1089_p0 = pnand %p1088_p13, %p1087_p12 }
  0x18   : > { %p1090_p3 = pneg %p1089_p0 }
  0x1a   : > { %p1095_p7 = pnand %p1093_p5, %p1090_p3 }
  0x1c   : > { %1098 = shalt.err (!%p1095_p7)
}
  0x1d   : > { %s1099_s8 = scalar_lea.vmem %s147_s24, 32  ;;  %p1107_p2 = scmp.lt.s32.totalorder %s147_s24, %s147_s24 }
  0x1e   : > { %p1100_p10 = scmp.ne.s32.totalorder %s147_s24, %s1099_s8  ;;  %p1108_p6 = scmp.lt.s32.totalorder %s1099_s8, %s1099_s8 }
  0x20   : > { %p1102_p9 = pnand %p1100_p10, %p1088_p13  ;;  %p1109_p4 = por %p1108_p6, %p1107_p2 }
  0x22   : > { %p1103_p1 = pneg %p1102_p9 }
  0x24   : > { %p1110_p8 = pnand %p1109_p4, %p1103_p1 }
  0x26   : > { %1113 = shalt.err (!%p1110_p8)
}
  0x27   : > { %1006 = dma.hbm_to_vmem [thread:$0]  (!%p1358_p11), %s2111_s0, 32, %s147_s24, [#allocation3]  }
  0x28   : > { %s1114_s23 = scalar_lea.hbm %s2112_s1, 32 }
  0x29   : > { %p1115_p9 = scmp.ne.s32.totalorder %s2112_s1, %s1114_s23  ;;  %p1121_p4 = scmp.lt.u32.totalorder %s1114_s23, %s2112_s1 }
  0x2b   : > { %p1117_p2 = pnand %p1115_p9, %p1088_p13 }
  0x2d   : > { %p1118_p1 = pneg %p1117_p2 }
  0x2f   : > { %p1123_p6 = pnand %p1121_p4, %p1118_p1 }
  0x31   : > { %1126 = shalt.err (!%p1123_p6)
}
  0x32   : > { %s1127_s24 = scalar_lea.vmem %s1362_s26, 32  ;;  %p1135_p3 = scmp.lt.s32.totalorder %s1362_s26, %s1362_s26 }
  0x33   : > { %p1128_p8 = scmp.ne.s32.totalorder %s1362_s26, %s1127_s24  ;;  %p1136_p5 = scmp.lt.s32.totalorder %s1127_s24, %s1127_s24 }
  0x35   : > { %p1130_p12 = pnand %p1128_p8, %p1088_p13  ;;  %p1137_p7 = por %p1136_p5, %p1135_p3 }
  0x37   : > { %p1131_p0 = pneg %p1130_p12 }
  0x39   : > { %p1138_p10 = pnand %p1137_p7, %p1131_p0 }
  0x3b   : > { %1141 = shalt.err (!%p1138_p10)
}
  0x3c   : > { %1009 = dma.hbm_to_vmem [thread:$0]  (!%p1358_p11), %s2112_s1, 32, %s1362_s26, [#allocation6]  }
  0x3d   : > { %s30_s6 = sadd.s32 1, %s1258_s16  ;;  %s81_s7 = sadd.s32 1, %s1250_s14 }
  0x3e   : > { %p32_p13 = scmp.ge.s32.totalorder %s30_s6, 2  ;;  %p88_p9 = scmp.ne.s32.totalorder %s1250_s14, %s1246_s13 }
  0x3f   : > { %p89_p2 = scmp.eq.s32.totalorder %s1262_s17, 0  ;;  %p1020_p1 = scmp.lt.s32.totalorder %s1262_s17, 2 }
  0x40   : > { %s2247_s6 = smov (%p32_p13, %s30_s6), 0  ;;  %p2142_p6 = scmp.eq.s32.totalorder %s1330_s18, 1 }
  0x41   : > { %p90_p4 = por %p89_p2, %p88_p9  ;;  %s76_s8 = ssub.s32 %s1258_s16, %s2247_s6 }
  0x42   : > { %p1421_p8 = por %p2142_p6, %p88_p9  ;;  %s168_s9 = sand.u32 1, %s1262_s17  }
  0x43   : > { %p79_p12 = scmp.eq.s32.totalorder %s76_s8, 0  ;;  %s170_s10 = sand.u32 1, %s1250_s14  }
  0x44   : > { %s989_s26 = sshll.u32 %s1258_s16, 7  ;;  %s957_s19 = sshll.u32 %s170_s10, 3 }
  0x45   : > { %s1431_s11 = scalar_select %p79_p12, %s1250_s14, %s81_s7  }
  0x46   : > { %s1436_s28 = scalar_lea.hbm %s2113_s2, %s989_s26  ;;  %p1438_p11 = pnand %p1020_p1, %p90_p4 }
  0x47   : > { %s172_s30 = scalar_lea.vmem [#allocation7], %s957_s19  ;;  %s169_s4 = scalar_lea.sflag [#allocation3], %s168_s9 }
  0x48   : > { %s182_s24 = sshll.u32 %s172_s30, 4  ;;  %s1142_s5 = scalar_lea.hbm %s1436_s28, 128  ;;  %s1442_s24 = int_to_ptr.vmem [resolvable:$true] %s182_s24 }
  0x49   : > { %p1143_p0 = scmp.ne.s32.totalorder %s1436_s28, %s1142_s5  ;;  %p1144_p3 = pneg %p1438_p11 }
  0x4a   : > { %s1147_s10 = scalar_lea.hbm %s2113_s2, 256  ;;  %p1148_p10 = scmp.lt.u32.totalorder %s1436_s28, %s2113_s2 }
  0x4b   : > { %p1145_p5 = pnand %p1144_p3, %p1143_p0  ;;  %p1149_p13 = scmp.lt.u32.totalorder %s1147_s10, %s1142_s5 }
  0x4c   : > { %p1151_p2 = scmp.lt.u32.totalorder %s1142_s5, %s1436_s28 }
  0x4d   : > { %p1146_p7 = pneg %p1145_p5  ;;  %p1150_p9 = por %p1149_p13, %p1148_p10 }
  0x4f   : > { %p1152_p1 = por %p1151_p2, %p1150_p9 }
  0x51   : > { %p1153_p4 = pnand %p1152_p1, %p1146_p7 }
  0x53   : > { %1156 = shalt.err (!%p1153_p4)
}
  0x54   : > { %s1157_s9 = scalar_lea.vmem %s1442_s24, 128  ;;  %s1266_s19 = smov [#allocation7]  }
  0x55   : > { %p1158_p6 = scmp.ne.s32.totalorder %s1442_s24, %s1157_s9  ;;  %s1162_s25 = sshll.u32 %s1266_s19, 4  ;;  %s1163_s25 = int_to_ptr.vmem [resolvable:$false] %s1162_s25 }
  0x56   : > { %s1164_s30 = scalar_lea.vmem %s1163_s25, 256  ;;  %p1165_p5 = scmp.lt.s32.totalorder %s1442_s24, %s1163_s25 }
  0x57   : > { %p1160_p12 = pnand %p1158_p6, %p1144_p3  ;;  %p1166_p10 = scmp.lt.s32.totalorder %s1164_s30, %s1157_s9 }
  0x59   : > { %p1161_p0 = pneg %p1160_p12  ;;  %p1167_p13 = por %p1166_p10, %p1165_p5 }
  0x5b   : > { %p1168_p9 = pnand %p1167_p13, %p1161_p0 }
  0x5d   : > { %1171 = shalt.err (!%p1168_p9)
}
  0x5e   : > { %1013 = dma.hbm_to_vmem [thread:$0]  (!%p1438_p11), %s1436_s28, 128, %s1442_s24, %s169_s4  }
  0x5f   : > { %p2145_p7 = scmp.ne.s32.totalorder %s2140_s22, 0 }
  0x60   : > { %p2146_p3 = scmp.eq.s32.totalorder (!%p2145_p7), %s1330_s18, 0 }
  0x61   : > { %191 = sbr.rel (%p2145_p7) target bundleno = 957 (0x3bd), region = 32 }
  0x68   : > { %1225 = dma.done.wait (%p2146_p3), [#allocation3], 32   ;;  %p2147_p2 = pmov %p2146_p3 }
  0x6a   : > { %1227 = vsyncadd (%p2147_p2), [#allocation3], 4294967264  ;;  %p2148_p1 = pmov %p2147_p2 }
  0x6c   : > { %1229 = dma.done.wait (%p2148_p1), [#allocation6], 32   ;;  %p2149_p4 = pmov %p2148_p1 }
  0x6d   : > { %s201_s29 = sand.u32 1, %s1330_s18   ;;  %s1481_s28 = sand.u32 1, %s1246_s13  }
  0x6e   : > { %1231 = vsyncadd (%p2149_p4), [#allocation6], 4294967264  ;;  %s963_s22 = sshll.u32 %s1481_s28, 3  ;;  %s202_s24 = scalar_lea.sflag [#allocation3], %s201_s29 }
  0x6f   : > { %s205_s4 = scalar_lea.vmem [#allocation7], %s963_s22  ;;  %p2150_p11 = scmp.ne.s32.totalorder %s2138_s20, 0 }
  0x71   : > { %1233 = dma.done.wait (%p2150_p11), %s202_s24, 128  }
  0x72   : > { %1235 = vsyncadd (%p2150_p11), %s202_s24, 4294967168  ;;  %v231_v0 = vlaneseq  ;;  %s964_s5 = sshll.u32 %s1481_s28, 5  ;;  %v1491_v4 = vld [vmem:[%s205_s4] sm:$0xff]  ;;  %v229_v5 = vld [vmem:[#allocation2] sm:$0x3]  ;;  %s1267_s20 = smov 112  }
  0x73   : > { %s1496_s18 = scalar_lea.vmem [#allocation8], %s964_s5  ;;  %s1268_s7 = smov 16   ;;  %v230_v8 = vld [vmem:[#allocation5] sm:$0x3]  ;;  %v1525_v11 = vcombine.high %v1491_v4, %v1491_v4  ;;  %v1275_v58 = vmov 0  }
  0x74   : > { %v232_v1 = vshrl.u32 %v231_v0, 7  ;;  %983 = vst [vmem:[%s1496_s18 + $0x18] sm:$0xff] %v1491_v4  ;;  %s1269_s8 = smov 32   ;;  %s1270_s10 = smov 96   ;;  %v1591_v12 = vand.u32 127, %v231_v0 }
  0x75   : > { %s1271_s26 = smov 1   ;;  %s1272_s23 = smov 127  }
  0x76   : > { %v1489_v2 = vsub.s32 0, %v232_v1  ;;  %v237_v3 = vsub.s32 1, %v232_v1  ;;  %s1273_s9 = smov 2   ;;  %s1274_s19 = smov 126   ;;  %vm2121_vm0 = vcmp.lt.s32.totalorder %v1591_v12, 16  ;;  %vm2120_vm1 = vcmp.lt.s32.totalorder %v1591_v12, 112 }
  0x77   : > { %vm2119_vm2 = vcmp.lt.s32.totalorder %v1591_v12, 32  ;;  %vm2118_vm8 = vcmp.lt.s32.totalorder %v1591_v12, 96  ;;  %s990_s25 = sshll.u32 %s1254_s15, 9  ;;  %s845_s30 = sshll.u32 %s1496_s18, 4  ;;  %s2061_s30 = int_to_ptr.vmem [resolvable:$true] %s845_s30 }
  0x78   : > { %v1494_v6 = vrot.slane %v229_v5, %v1489_v2  ;;  %v1500_v7 = vrot.slane %v229_v5, %v237_v3  ;;  %v1507_v9 = vrot.slane %v230_v8, %v1489_v2  ;;  %v1509_v10 = vrot.slane %v230_v8, %v237_v3  ;;  %s2059_s24 = scalar_lea.hbm %s2114_s3, %s990_s25  ;;  %s830_s15 = scalar_lea.sflag [#allocation4], %s1481_s28 }
  0x79   : > { %s1172_s4 = scalar_lea.vmem %s2061_s30, 512  ;;  %s1276_s5 = smov [#allocation8]  }
  0x7a   : > { %276 = vrot.lane.b32.xlu1 %v1494_v6, %s1267_s20  ;;  %239 = vrot.lane.b32.xlu0 %v1494_v6, %s1268_s7  ;;  %p1173_p6 = scmp.ne.s32.totalorder %s2061_s30, %s1172_s4 }
  0x7c   : > { %p1174_p12 = pnand %p1173_p6, %p1421_p8 }
  0x7e   : > { %278 = vrot.lane.b32.xlu1 %v1500_v7, %s1267_s20  ;;  %241 = vrot.lane.b32.xlu0 %v1500_v7, %s1268_s7  ;;  %p1175_p0 = pneg %p1174_p12 }
  0x82   : > { %258 = vrot.lane.b32.xlu1 %v1509_v10, %s1268_s7  ;;  %256 = vrot.lane.b32.xlu0 %v1507_v9, %s1268_s7 }
  0x86   : > { %359 = vrot.lane.b32.xlu1 %v1500_v7, %s1269_s8  ;;  %357 = vrot.lane.b32.xlu0 %v1494_v6, %s1269_s8 }
  0x8a   : > { %468 = vrot.lane.b32.xlu0 %v1491_v4, %s1268_s7  ;;  %470 = vrot.lane.b32.xlu1 %v1525_v11, %s1268_s7 }
  0x8e   : > { %283 = vrot.lane.b32.xlu0 %v1507_v9, %s1267_s20  ;;  %285 = vrot.lane.b32.xlu1 %v1509_v10, %s1267_s20 }
  0x92   : > { %384 = vrot.lane.b32.xlu0 %v1494_v6, %s1270_s10  ;;  %386 = vrot.lane.b32.xlu1 %v1500_v7, %s1270_s10 }
  0x96   : > { %364 = vrot.lane.b32.xlu0 %v1507_v9, %s1269_s8  ;;  %366 = vrot.lane.b32.xlu1 %v1509_v10, %s1269_s8 }
  0x9a   : > { %496 = vrot.lane.b32.xlu0 %v1491_v4, %s1267_s20  ;;  %498 = vrot.lane.b32.xlu1 %v1525_v11, %s1267_s20 }
  0x9e   : > { %391 = vrot.lane.b32.xlu0 %v1507_v9, %s1270_s10  ;;  %393 = vrot.lane.b32.xlu1 %v1509_v10, %s1270_s10 }
  0xa2   : > { %518 = vrot.lane.b32.xlu0 %v1491_v4, %s1269_s8  ;;  %520 = vrot.lane.b32.xlu1 %v1525_v11, %s1269_s8 }
  0xa6   : > { %540 = vrot.lane.b32.xlu0 %v1491_v4, %s1270_s10  ;;  %542 = vrot.lane.b32.xlu1 %v1525_v11, %s1270_s10 }
  0xaa   : > { %310 = vrot.lane.b32.xlu0 %v1507_v9, %s1271_s26  ;;  %312 = vrot.lane.b32.xlu1 %v1509_v10, %s1271_s26 }
  0xae   : > { %337 = vrot.lane.b32.xlu0 %v1507_v9, %s1272_s23  ;;  %339 = vrot.lane.b32.xlu1 %v1509_v10, %s1272_s23 }
  0xb2   : > { %303 = vrot.lane.b32.xlu0 %v1494_v6, %s1271_s26  ;;  %305 = vrot.lane.b32.xlu1 %v1500_v7, %s1271_s26 }
  0xb6   : > { %418 = vrot.lane.b32.xlu0 %v1507_v9, %s1273_s9  ;;  %420 = vrot.lane.b32.xlu1 %v1509_v10, %s1273_s9 }
  0xba   : > { %330 = vrot.lane.b32.xlu0 %v1494_v6, %s1272_s23  ;;  %332 = vrot.lane.b32.xlu1 %v1500_v7, %s1272_s23 }
  0xbe   : > { %445 = vrot.lane.b32.xlu0 %v1507_v9, %s1274_s19  ;;  %447 = vrot.lane.b32.xlu1 %v1509_v10, %s1274_s19 }
  0xc2   : > { %411 = vrot.lane.b32.xlu0 %v1494_v6, %s1273_s9  ;;  %413 = vrot.lane.b32.xlu1 %v1500_v7, %s1273_s9 }
  0xc6   : > { %438 = vrot.lane.b32.xlu0 %v1494_v6, %s1274_s19  ;;  %440 = vrot.lane.b32.xlu1 %v1500_v7, %s1274_s19 }
  0xec   : > { %v277_v13 = vpop.permute.xlu1 %276  ;;  %v240_v14 = vpop.permute.xlu0 %239 }
  0xf0   : > { %v279_v15 = vpop.permute.xlu1 %278  ;;  %v242_v16 = vpop.permute.xlu0 %241 }
  0xf1   : > { %v246_v17 = vsel %vm2121_vm0, %v240_v14, %v242_v16  ;;  %v247_v18 = vsel %vm2121_vm0, %v242_v16, %v240_v14  ;;  %v281_v24 = vsel %vm2120_vm1, %v277_v13, %v279_v15  ;;  %v282_v28 = vsel %vm2120_vm1, %v279_v15, %v277_v13 }
  0xf2   : > { %v262_v19 = vsub.s32 %v247_v18, %v1494_v6  ;;  %v263_v20 = vsub.s32 %v246_v17, %v1500_v7  ;;  %v289_v29 = vsub.s32 %v281_v24, %v1494_v6  ;;  %v290_v35 = vsub.s32 %v282_v28, %v1500_v7 }
  0xf4   : > { %v259_v21 = vpop.permute.xlu1 %258  ;;  %v257_v22 = vpop.permute.xlu0 %256  ;;  %v265_v23 = vsub.s32 0, %v262_v19  ;;  %v268_v25 = vsub.s32 0, %v263_v20  ;;  %v292_v38 = vsub.s32 0, %v289_v29  ;;  %v295_v46 = vsub.s32 0, %v290_v35 }
  0xf5   : > { %v261_v37 = vsel %vm2121_vm0, %v259_v21, %v257_v22  ;;  %v260_v39 = vsel %vm2121_vm0, %v257_v22, %v259_v21 }
  0xf6   : > { %v965_v30 = vmin.u32 %v265_v23, %v262_v19  ;;  %v966_v31 = vmin.u32 %v268_v25, %v263_v20  ;;  %vm272_vm5 = vcmp.eq.s32.totalorder %v261_v37, %v1507_v9  ;;  %vm273_vm6 = vcmp.eq.s32.totalorder %v260_v39, %v1509_v10 }
  0xf7   : > { %v967_v50 = vmin.u32 %v292_v38, %v289_v29  ;;  %v968_v55 = vmin.u32 %v295_v46, %v290_v35 }
  0xf8   : > { %v360_v26 = vpop.permute.xlu1 %359  ;;  %v358_v27 = vpop.permute.xlu0 %357  ;;  %vm270_vm3 = vcmp.eq.s32.totalorder %v965_v30, 1  ;;  %vm271_vm4 = vcmp.eq.s32.totalorder %v966_v31, 1 }
  0xf9   : > { %v363_v32 = vsel %vm2119_vm2, %v360_v26, %v358_v27  ;;  %v362_v36 = vsel %vm2119_vm2, %v358_v27, %v360_v26  ;;  %vm274_vm7 = vmand %vm270_vm3, %vm272_vm5  ;;  %vm297_vm12 = vcmp.eq.s32.totalorder %v967_v50, 1  ;;  %vm298_vm13 = vcmp.eq.s32.totalorder %v968_v55, 1 }
  0xfa   : > { %v370_v40 = vsub.s32 %v363_v32, %v1494_v6  ;;  %v371_v41 = vsub.s32 %v362_v36, %v1500_v7  ;;  %vm275_vm9 = vmand %vm271_vm4, %vm273_vm6  ;;  %v479_v59 = vsel %vm274_vm7, 1, %v1275_v58  ;;  %v2159_v55 = vmov 0 }
  0xfb   : > { %v480_v60 = vsel %vm275_vm9, 1, %v1275_v58  ;;  %v484_v8 = vrot.slane %v479_v59, %v1489_v2 }
  0xfc   : > { %v469_v33 = vpop.permute.xlu0 %468  ;;  %v471_v34 = vpop.permute.xlu1 %470  ;;  %v373_v47 = vsub.s32 0, %v370_v40  ;;  %v376_v51 = vsub.s32 0, %v371_v41  ;;  %v488_v15 = vrot.slane %v480_v60, %v1489_v2 }
  0xfd   : > { %v472_v42 = vsel %vm2121_vm0, %v469_v33, %v471_v34  ;;  %v473_v43 = vsel %vm2121_vm0, %v471_v34, %v469_v33 }
  0xfe   : > { %v476_v48 = vcombine.low %v473_v43, %v472_v42  ;;  %v973_v62 = vmin.u32 %v373_v47, %v370_v40  ;;  %v974_v1 = vmin.u32 %v376_v51, %v371_v41  ;;  %v2155_v41 = vmov 0 }
 0x100   : > { %v284_v44 = vpop.permute.xlu0 %283  ;;  %v286_v45 = vpop.permute.xlu1 %285  ;;  %v478_v63 = vmax.f32 %v1491_v4, %v476_v48  ;;  %vm378_vm5 = vcmp.eq.s32.totalorder %v973_v62, 2  ;;  %vm379_vm6 = vcmp.eq.s32.totalorder %v974_v1, 2 }
 0x101   : > { %v287_v49 = vsel %vm2120_vm1, %v284_v44, %v286_v45  ;;  %v288_v52 = vsel %vm2120_vm1, %v286_v45, %v284_v44  ;;  %v2157_v44 = vmov 0 }
 0x102   : > { %vm299_vm10 = vcmp.eq.s32.totalorder %v287_v49, %v1507_v9  ;;  %vm300_vm11 = vcmp.eq.s32.totalorder %v288_v52, %v1509_v10  ;;  %v492_v17 = vcombine.high %v478_v63, %v478_v63 }
 0x103   : > { %vm301_vm14 = vmand %vm297_vm12, %vm299_vm10  ;;  %vm1652_vm10 = vcmp.eq.s32.totalorder %v484_v8, 1 }
 0x104   : > { %v385_v53 = vpop.permute.xlu0 %384  ;;  %v387_v54 = vpop.permute.xlu1 %386  ;;  %vm302_vm15 = vmand %vm298_vm13, %vm300_vm11  ;;  %v504_v19 = vsel %vm301_vm14, 1, %v1275_v58  ;;  %vm1656_vm11 = vcmp.eq.s32.totalorder %v488_v15, 1  ;;  %v494_v30 = vsel %vm1652_vm10, %v478_v63, %v1491_v4 }
 0x105   : > { %v389_v56 = vsel %vm2118_vm8, %v385_v53, %v387_v54  ;;  %v390_v57 = vsel %vm2118_vm8, %v387_v54, %v385_v53  ;;  %v505_v22 = vsel %vm302_vm15, 1, %v1275_v58  ;;  %v509_v28 = vrot.slane %v504_v19, %v1489_v2 }
 0x106   : > { %v397_v61 = vsub.s32 %v389_v56, %v1494_v6  ;;  %v398_v0 = vsub.s32 %v390_v57, %v1500_v7  ;;  %v495_v31 = vsel %vm1656_vm11, %v492_v17, %v1525_v11  ;;  %v513_v32 = vrot.slane %v505_v22, %v1489_v2 }
 0x107   : > { %v2161_v56 = vmov 0 }
 0x108   : > { %v365_v3 = vpop.permute.xlu0 %364  ;;  %v367_v5 = vpop.permute.xlu1 %366  ;;  %v400_v16 = vsub.s32 0, %v397_v61  ;;  %v403_v18 = vsub.s32 0, %v398_v0 }
 0x109   : > { %v368_v13 = vsel %vm2119_vm2, %v365_v3, %v367_v5  ;;  %v369_v14 = vsel %vm2119_vm2, %v367_v5, %v365_v3  ;;  %v2163_v3 = vmov 0  ;;  %v2165_v5 = vmov 0 }
 0x10a   : > { %vm380_vm3 = vcmp.eq.s32.totalorder %v369_v14, %v1507_v9  ;;  %vm381_vm4 = vcmp.eq.s32.totalorder %v368_v13, %v1509_v10  ;;  %v975_v24 = vmin.u32 %v400_v16, %v397_v61  ;;  %v976_v29 = vmin.u32 %v403_v18, %v398_v0 }
 0x10b   : > { %vm382_vm7 = vmand %vm378_vm5, %vm380_vm3 }
 0x10c   : > { %v497_v20 = vpop.permute.xlu0 %496  ;;  %v499_v21 = vpop.permute.xlu1 %498  ;;  %vm383_vm9 = vmand %vm379_vm6, %vm381_vm4  ;;  %v526_v33 = vsel %vm382_vm7, 1, %v1275_v58  ;;  %vm405_vm12 = vcmp.eq.s32.totalorder %v975_v24, 2  ;;  %vm406_vm15 = vcmp.eq.s32.totalorder %v976_v29, 2  ;;  %vm1680_vm4 = vcmp.eq.s32.totalorder %v509_v28, 1 }
 0x10d   : > { %v500_v23 = vsel %vm2120_vm1, %v497_v20, %v499_v21  ;;  %v501_v27 = vsel %vm2120_vm1, %v499_v21, %v497_v20  ;;  %v527_v34 = vsel %vm383_vm9, 1, %v1275_v58  ;;  %v531_v11 = vrot.slane %v526_v33, %v1489_v2 }
 0x10e   : > { %v502_v35 = vmax.f32 %v494_v30, %v500_v23  ;;  %v503_v38 = vmax.f32 %v495_v31, %v501_v27  ;;  %v535_v40 = vrot.slane %v527_v34, %v1489_v2  ;;  %v2156_v41 = vsel %vm1680_vm4, 4294967295, %v2155_v41 }
 0x10f   : > { %vm1685_vm6 = vcmp.eq.s32.totalorder %v513_v32, 1  ;;  %vm1700_vm7 = vcmp.eq.s32.totalorder %v531_v11, 1 }
 0x110   : > { %v392_v36 = vpop.permute.xlu0 %391  ;;  %v394_v37 = vpop.permute.xlu1 %393  ;;  %v2158_v44 = vsel %vm1685_vm6, 4294967295, %v2157_v44  ;;  %v516_v45 = vsel %vm1680_vm4, %v502_v35, %v494_v30  ;;  %v517_v48 = vsel %vm1685_vm6, %v503_v38, %v495_v31  ;;  %v2160_v55 = vsel %vm1700_vm7, 4294967295, %v2159_v55 }
 0x111   : > { %v395_v39 = vsel %vm2118_vm8, %v392_v36, %v394_v37  ;;  %v396_v4 = vsel %vm2118_vm8, %v394_v37, %v392_v36  ;;  %vm1704_vm9 = vcmp.eq.s32.totalorder %v535_v40, 1  ;;  %vm2169_vm4 = vcmp.lt.s32.totalorder %v1591_v12, 126 }
 0x112   : > { %vm407_vm13 = vcmp.eq.s32.totalorder %v395_v39, %v1507_v9  ;;  %vm408_vm14 = vcmp.eq.s32.totalorder %v396_v4, %v1509_v10  ;;  %v2162_v56 = vsel %vm1704_vm9, 4294967295, %v2161_v56 }
 0x113   : > { %vm409_vm3 = vmand %vm405_vm12, %vm407_vm13 }
 0x114   : > { %vm410_vm5 = vmand %vm406_vm15, %vm408_vm14  ;;  %v548_v42 = vsel %vm409_vm3, 1, %v1275_v58  ;;  %v519_v43 = vpop.permute.xlu0 %518  ;;  %v521_v46 = vpop.permute.xlu1 %520  ;;  %vm2122_vm14 = vcmp.lt.s32.totalorder %v1591_v12, 1  ;;  %vm2135_vm15 = vcmp.lt.s32.totalorder %v1591_v12, 127  ;;  %vm2124_vm3 = vcmp.lt.s32.totalorder %v1591_v12, 2 }
 0x115   : > { %v549_v47 = vsel %vm410_vm5, 1, %v1275_v58  ;;  %v522_v49 = vsel %vm2119_vm2, %v519_v43, %v521_v46  ;;  %v523_v50 = vsel %vm2119_vm2, %v521_v46, %v519_v43  ;;  %v553_v53 = vrot.slane %v548_v42, %v1489_v2 }
 0x116   : > { %v524_v51 = vmax.f32 %v516_v45, %v523_v50  ;;  %v525_v52 = vmax.f32 %v517_v48, %v522_v49  ;;  %v557_v54 = vrot.slane %v549_v47, %v1489_v2  ;;  %vm2123_vm5 = vcmp.lt.s32.totalorder %v1591_v12, 126 }
 0x117   : > { %vm1716_vm12 = vcmp.eq.s32.totalorder %v553_v53, 1 }
 0x118   : > { %v541_v57 = vpop.permute.xlu0 %540  ;;  %v538_v59 = vsel %vm1700_vm7, %v524_v51, %v516_v45  ;;  %v539_v60 = vsel %vm1704_vm9, %v525_v52, %v517_v48  ;;  %v543_v61 = vpop.permute.xlu1 %542  ;;  %v2164_v3 = vsel %vm1716_vm12, 4294967295, %v2163_v3  ;;  %vm1720_vm13 = vcmp.eq.s32.totalorder %v557_v54, 1 }
 0x119   : > { %v544_v62 = vsel %vm2118_vm8, %v541_v57, %v543_v61  ;;  %v545_v63 = vsel %vm2118_vm8, %v543_v61, %v541_v57  ;;  %v2166_v5 = vsel %vm1720_vm13, 4294967295, %v2165_v5  ;;  %vm2167_vm7 = vcmp.lt.s32.totalorder %v1591_v12, 2 }
 0x11a   : > { %v546_v0 = vmax.f32 %v538_v59, %v544_v62  ;;  %v547_v1 = vmax.f32 %v539_v60, %v545_v63  ;;  %vm2168_vm6 = vmmov %vm2167_vm7 }
 0x11c   : > { %v1726_v8 = vsel %vm1716_vm12, %v546_v0, %v538_v59  ;;  %v1730_v13 = vsel %vm1720_vm13, %v547_v1, %v539_v60  ;;  %v311_v14 = vpop.permute.xlu0 %310  ;;  %v313_v15 = vpop.permute.xlu1 %312 }
 0x11d   : > { %564 = vrot.lane.b32.xlu1 %v1730_v13, %s1271_s26  ;;  %562 = vrot.lane.b32.xlu0 %v1726_v8, %s1271_s26  ;;  %v314_v20 = vsel %vm2122_vm14, %v311_v14, %v313_v15  ;;  %v315_v21 = vsel %vm2122_vm14, %v313_v15, %v311_v14 }
 0x11e   : > { %v318_v24 = vsub.s32 %v315_v21, %v1507_v9  ;;  %v319_v27 = vsub.s32 %v314_v20, %v1509_v10 }
 0x120   : > { %v338_v16 = vpop.permute.xlu0 %337  ;;  %v340_v17 = vpop.permute.xlu1 %339  ;;  %v321_v32 = vsub.s32 0, %v318_v24  ;;  %v324_v33 = vsub.s32 0, %v319_v27 }
 0x121   : > { %586 = vrot.lane.b32.xlu1 %v1730_v13, %s1272_s23  ;;  %584 = vrot.lane.b32.xlu0 %v1726_v8, %s1272_s23  ;;  %v341_v28 = vsel %vm2135_vm15, %v338_v16, %v340_v17  ;;  %v342_v29 = vsel %vm2135_vm15, %v340_v17, %v338_v16 }
 0x122   : > { %v345_v34 = vsub.s32 %v341_v28, %v1507_v9  ;;  %v346_v35 = vsub.s32 %v342_v29, %v1509_v10  ;;  %v969_v38 = vmin.u32 %v321_v32, %v318_v24  ;;  %v970_v39 = vmin.u32 %v324_v33, %v319_v27 }
 0x124   : > { %v304_v18 = vpop.permute.xlu0 %303  ;;  %v306_v19 = vpop.permute.xlu1 %305  ;;  %v348_v4 = vsub.s32 0, %v345_v34  ;;  %v351_v11 = vsub.s32 0, %v346_v35  ;;  %vm326_vm8 = vcmp.eq.s32.totalorder %v969_v38, 1  ;;  %vm327_vm2 = vcmp.eq.s32.totalorder %v970_v39, 1 }
 0x125   : > { %608 = vrot.lane.b32.xlu1 %v1730_v13, %s1273_s9  ;;  %606 = vrot.lane.b32.xlu0 %v1726_v8, %s1273_s9  ;;  %v309_v45 = vsel %vm2122_vm14, %v306_v19, %v304_v18  ;;  %v308_v48 = vsel %vm2122_vm14, %v304_v18, %v306_v19 }
 0x126   : > { %v971_v50 = vmin.u32 %v348_v4, %v345_v34  ;;  %v972_v51 = vmin.u32 %v351_v11, %v346_v35  ;;  %vm316_vm1 = vcmp.eq.s32.totalorder %v309_v45, %v1494_v6  ;;  %vm317_vm0 = vcmp.eq.s32.totalorder %v308_v48, %v1500_v7 }
 0x127   : > { %vm328_vm14 = vmand %vm316_vm1, %vm326_vm8 }
 0x128   : > { %v419_v22 = vpop.permute.xlu0 %418  ;;  %v421_v23 = vpop.permute.xlu1 %420  ;;  %vm354_vm13 = vcmp.eq.s32.totalorder %v972_v51, 1  ;;  %v570_v17 = vsel %vm328_vm14, 1, %v1275_v58  ;;  %vm2173_vm14 = vcmp.lt.s32.totalorder %v1591_v12, 1 }
 0x129   : > { %630 = vrot.lane.b32.xlu1 %v1730_v13, %s1274_s19  ;;  %628 = vrot.lane.b32.xlu0 %v1726_v8, %s1274_s19  ;;  %v423_v36 = vsel %vm2124_vm3, %v421_v23, %v419_v22  ;;  %v422_v37 = vsel %vm2124_vm3, %v419_v22, %v421_v23  ;;  %vm329_vm3 = vmand %vm317_vm0, %vm327_vm2  ;;  %v575_v22 = vrot.slane %v570_v17, %v1489_v2 }
 0x12a   : > { %v426_v40 = vsub.s32 %v423_v36, %v1507_v9  ;;  %v427_v46 = vsub.s32 %v422_v37, %v1509_v10  ;;  %v571_v18 = vsel %vm329_vm3, 1, %v1275_v58  ;;  %vm2174_vm3 = vmmov %vm2173_vm14 }
 0x12b   : > { %v579_v23 = vrot.slane %v571_v18, %v1489_v2 }
 0x12c   : > { %v331_v30 = vpop.permute.xlu0 %330  ;;  %v333_v31 = vpop.permute.xlu1 %332  ;;  %v429_v52 = vsub.s32 0, %v426_v40  ;;  %v432_v54 = vsub.s32 0, %v427_v46 }
 0x12d   : > { %v335_v57 = vsel %vm2135_vm15, %v331_v30, %v333_v31  ;;  %v336_v60 = vsel %vm2135_vm15, %v333_v31, %v331_v30 }
 0x12e   : > { %v977_v63 = vmin.u32 %v429_v52, %v426_v40  ;;  %vm343_vm12 = vcmp.eq.s32.totalorder %v335_v57, %v1494_v6  ;;  %v978_v0 = vmin.u32 %v432_v54, %v427_v46  ;;  %vm344_vm9 = vcmp.eq.s32.totalorder %v336_v60, %v1500_v7 }
 0x12f   : > { %vm356_vm1 = vmand %vm344_vm9, %vm354_vm13 }
 0x130   : > { %v446_v42 = vpop.permute.xlu0 %445  ;;  %v448_v43 = vpop.permute.xlu1 %447  ;;  %vm434_vm2 = vcmp.eq.s32.totalorder %v977_v63, 2  ;;  %vm435_vm15 = vcmp.eq.s32.totalorder %v978_v0, 2  ;;  %v593_v28 = vsel %vm356_vm1, 1, %v1275_v58  ;;  %vm1823_vm1 = vcmp.eq.s32.totalorder %v579_v23, 1 }
 0x131   : > { %v449_v47 = vsel %vm2123_vm5, %v446_v42, %v448_v43  ;;  %v450_v49 = vsel %vm2123_vm5, %v448_v43, %v446_v42  ;;  %vm353_vm5 = vcmp.eq.s32.totalorder %v971_v50, 1  ;;  %v601_v37 = vrot.slane %v593_v28, %v1489_v2 }
 0x132   : > { %v453_v53 = vsub.s32 %v449_v47, %v1507_v9  ;;  %v454_v59 = vsub.s32 %v450_v49, %v1509_v10  ;;  %vm355_vm0 = vmand %vm343_vm12, %vm353_vm5 }
 0x133   : > { %v592_v27 = vsel %vm355_vm0, 1, %v1275_v58 }
 0x134   : > { %v412_v61 = vpop.permute.xlu0 %411  ;;  %v414_v62 = vpop.permute.xlu1 %413  ;;  %v456_v9 = vsub.s32 0, %v453_v53  ;;  %v459_v1 = vsub.s32 0, %v454_v59  ;;  %v597_v36 = vrot.slane %v592_v27, %v1489_v2 }
 0x135   : > { %v417_v10 = vsel %vm2167_vm7, %v414_v62, %v412_v61  ;;  %v416_v14 = vsel %vm2168_vm6, %v412_v61, %v414_v62  ;;  %vm2170_vm6 = vmmov %vm2169_vm4 }
 0x136   : > { %v979_v19 = vmin.u32 %v456_v9, %v453_v53  ;;  %vm424_vm8 = vcmp.eq.s32.totalorder %v417_v10, %v1494_v6  ;;  %v980_v20 = vmin.u32 %v459_v1, %v454_v59  ;;  %vm425_vm7 = vcmp.eq.s32.totalorder %v416_v14, %v1500_v7 }
 0x137   : > { %vm1805_vm9 = vmand %vm424_vm8, %vm434_vm2 }
 0x138   : > { %v439_v15 = vpop.permute.xlu0 %438  ;;  %v441_v16 = vpop.permute.xlu1 %440  ;;  %vm437_vm12 = vmand %vm425_vm7, %vm435_vm15  ;;  %vm461_vm13 = vcmp.eq.s32.totalorder %v979_v19, 2  ;;  %vm462_vm5 = vcmp.eq.s32.totalorder %v980_v20, 2  ;;  %vm1819_vm15 = vcmp.eq.s32.totalorder %v575_v22, 1  ;;  %vm2179_vm7 = vcmp.lt.s32.totalorder %v1591_v12, 127 }
 0x139   : > { %v443_v21 = vsel %vm2169_vm4, %v439_v15, %v441_v16  ;;  %v444_v24 = vsel %vm2170_vm6, %v441_v16, %v439_v15  ;;  %v615_v39 = vsel %vm437_vm12, 1, %v1275_v58  ;;  %vm2180_vm6 = vmmov %vm2179_vm7  ;;  %vm1848_vm12 = vcmp.eq.s32.totalorder %v601_v37, 1 }
 0x13a   : > { %vm451_vm4 = vcmp.eq.s32.totalorder %v443_v21, %v1494_v6  ;;  %vm452_vm0 = vcmp.eq.s32.totalorder %v444_v24, %v1500_v7  ;;  %v614_v7 = vsel %vm1805_vm9, 1, %v1275_v58  ;;  %v623_v49 = vrot.slane %v615_v39, %v1489_v2 }
 0x13b   : > { %vm463_vm2 = vmand %vm451_vm4, %vm461_vm13  ;;  %v619_v48 = vrot.slane %v614_v7, %v1489_v2  ;;  %vm1844_vm9 = vcmp.eq.s32.totalorder %v597_v36, 1  ;;  %vm2185_vm13 = vcmp.lt.s32.totalorder %v1591_v12, 2 }
 0x13c   : > { %vm464_vm8 = vmand %vm452_vm0, %vm462_vm5  ;;  %v636_v50 = vsel %vm463_vm2, 1, %v1275_v58  ;;  %vm2191_vm5 = vcmp.lt.s32.totalorder %v1591_v12, 126 }
 0x13d   : > { %v637_v51 = vsel %vm464_vm8, 1, %v1275_v58  ;;  %vm2186_vm4 = vmmov %vm2185_vm13  ;;  %v641_v63 = vrot.slane %v636_v50, %v1489_v2 }
 0x13e   : > { %v645_v58 = vrot.slane %v637_v51, %v1489_v2  ;;  %vm2192_vm0 = vmmov %vm2191_vm5 }
 0x13f   : > { %vm1880_vm2 = vcmp.eq.s32.totalorder %v641_v63, 1 }
 0x140   : > { %vm1884_vm8 = vcmp.eq.s32.totalorder %v645_v58, 1 }
 0x18f   : > { %v563_v30 = vpop.permute.xlu0 %562  ;;  %v565_v31 = vpop.permute.xlu1 %564 }
 0x190   : > { %v566_v32 = vsel %vm2173_vm14, %v563_v30, %v565_v31  ;;  %v567_v33 = vsel %vm2174_vm3, %v565_v31, %v563_v30  ;;  %vm1864_vm14 = vcmp.eq.s32.totalorder %v619_v48, 1  ;;  %vm1868_vm3 = vcmp.eq.s32.totalorder %v623_v49, 1 }
 0x191   : > { %v568_v34 = vmax.f32 %v1726_v8, %v567_v33  ;;  %v569_v35 = vmax.f32 %v1730_v13, %v566_v32 }
 0x193   : > { %v585_v4 = vpop.permute.xlu0 %584  ;;  %v582_v11 = vsel %vm1819_vm15, %v568_v34, %v1726_v8  ;;  %v583_v40 = vsel %vm1823_vm1, %v569_v35, %v1730_v13  ;;  %v587_v42 = vpop.permute.xlu1 %586 }
 0x194   : > { %v588_v43 = vsel %vm2179_vm7, %v585_v4, %v587_v42  ;;  %v589_v45 = vsel %vm2180_vm6, %v587_v42, %v585_v4  ;;  %vm2197_vm7 = vcmp.lt.s32.totalorder %v1591_v12, 16 }
 0x195   : > { %v590_v46 = vmax.f32 %v582_v11, %v588_v43  ;;  %v591_v47 = vmax.f32 %v583_v40, %v589_v45  ;;  %vm2198_vm6 = vmmov %vm2197_vm7 }
 0x197   : > { %v607_v52 = vpop.permute.xlu0 %606  ;;  %v604_v53 = vsel %vm1844_vm9, %v590_v46, %v582_v11  ;;  %v605_v54 = vsel %vm1848_vm12, %v591_v47, %v583_v40  ;;  %v609_v57 = vpop.permute.xlu1 %608 }
 0x198   : > { %v610_v59 = vsel %vm2185_vm13, %v607_v52, %v609_v57  ;;  %v611_v60 = vsel %vm2186_vm4, %v609_v57, %v607_v52  ;;  %vm2199_vm13 = vcmp.lt.s32.totalorder %v1591_v12, 112 }
 0x199   : > { %v612_v61 = vmax.f32 %v604_v53, %v611_v60  ;;  %v613_v62 = vmax.f32 %v605_v54, %v610_v59  ;;  %vm2200_vm4 = vmmov %vm2199_vm13 }
 0x19b   : > { %v629_v1 = vpop.permute.xlu0 %628  ;;  %v626_v10 = vsel %vm1864_vm14, %v612_v61, %v604_v53  ;;  %v627_v14 = vsel %vm1868_vm3, %v613_v62, %v605_v54  ;;  %v631_v15 = vpop.permute.xlu1 %630 }
 0x19c   : > { %v632_v2 = vsel %vm2191_vm5, %v629_v1, %v631_v15  ;;  %v633_v16 = vsel %vm2192_vm0, %v631_v15, %v629_v1  ;;  %vm2201_vm5 = vnez %v2156_v41  ;;  %vm2202_vm0 = vnez %v2158_v44 }
 0x19d   : > { %v634_v17 = vmax.f32 %v626_v10, %v632_v2  ;;  %v635_v18 = vmax.f32 %v627_v14, %v633_v16 }
 0x19f   : > { %v648_v21 = vsel %vm1880_vm2, %v634_v17, %v626_v10  ;;  %v649_v22 = vsel %vm1884_vm8, %v635_v18, %v627_v14 }
 0x1a0   : > { %v652_v23 = vcombine.low %v648_v21, %v649_v22  ;;  %658 = vrot.lane.b32.xlu1 %v649_v22, %s1268_s7  ;;  %656 = vrot.lane.b32.xlu0 %v648_v21, %s1268_s7 }
 0x1a2   : > { %981 = vst [vmem:[%s1496_s18 + $0x10] sm:$0xff] %v652_v23 }
 0x1a4   : > { %668 = vrot.lane.b32.xlu1 %v649_v22, %s1267_s20  ;;  %666 = vrot.lane.b32.xlu0 %v648_v21, %s1267_s20 }
 0x1a8   : > { %678 = vrot.lane.b32.xlu1 %v649_v22, %s1269_s8  ;;  %676 = vrot.lane.b32.xlu0 %v648_v21, %s1269_s8 }
 0x1ac   : > { %688 = vrot.lane.b32.xlu1 %v649_v22, %s1270_s10  ;;  %686 = vrot.lane.b32.xlu0 %v648_v21, %s1270_s10 }
 0x212   : > { %v659_v24 = vpop.permute.xlu1 %658  ;;  %v657_v27 = vpop.permute.xlu0 %656 }
 0x213   : > { %v660_v28 = vsel %vm2197_vm7, %v657_v27, %v659_v24  ;;  %v661_v29 = vsel %vm2198_vm6, %v659_v24, %v657_v27  ;;  %vm2203_vm7 = vcmp.lt.s32.totalorder %v1591_v12, 32 }
 0x214   : > { %v662_v30 = vmax.f32 %v648_v21, %v661_v29  ;;  %v663_v31 = vmax.f32 %v649_v22, %v660_v28  ;;  %vm2204_vm6 = vmmov %vm2203_vm7 }
 0x216   : > { %v669_v32 = vpop.permute.xlu1 %668  ;;  %v664_v33 = vsel %vm1652_vm10, %v662_v30, %v648_v21  ;;  %v665_v34 = vsel %vm1656_vm11, %v663_v31, %v649_v22  ;;  %v667_v35 = vpop.permute.xlu0 %666 }
 0x217   : > { %v670_v36 = vsel %vm2199_vm13, %v667_v35, %v669_v32  ;;  %v671_v37 = vsel %vm2200_vm4, %v669_v32, %v667_v35  ;;  %vm2205_vm13 = vnez %v2160_v55  ;;  %vm2206_vm4 = vnez %v2162_v56 }
 0x218   : > { %v672_v7 = vmax.f32 %v664_v33, %v670_v36  ;;  %v673_v39 = vmax.f32 %v665_v34, %v671_v37 }
 0x21a   : > { %v679_v4 = vpop.permute.xlu1 %678  ;;  %v674_v11 = vsel %vm2201_vm5, %v672_v7, %v664_v33  ;;  %v675_v40 = vsel %vm2202_vm0, %v673_v39, %v665_v34  ;;  %v677_v42 = vpop.permute.xlu0 %676  ;;  %vm2207_vm5 = vcmp.lt.s32.totalorder %v1591_v12, 96 }
 0x21b   : > { %v680_v43 = vsel %vm2203_vm7, %v677_v42, %v679_v4  ;;  %v681_v45 = vsel %vm2204_vm6, %v679_v4, %v677_v42  ;;  %vm2208_vm0 = vmmov %vm2207_vm5  ;;  %vm2209_vm7 = vnez %v2164_v3  ;;  %vm2210_vm6 = vnez %v2166_v5 }
 0x21c   : > { %v682_v46 = vmax.f32 %v674_v11, %v681_v45  ;;  %v683_v47 = vmax.f32 %v675_v40, %v680_v43 }
 0x21e   : > { %v689_v48 = vpop.permute.xlu1 %688  ;;  %v684_v49 = vsel %vm2205_vm13, %v682_v46, %v674_v11  ;;  %v685_v50 = vsel %vm2206_vm4, %v683_v47, %v675_v40  ;;  %v687_v51 = vpop.permute.xlu0 %686 }
 0x21f   : > { %v690_v52 = vsel %vm2207_vm5, %v687_v51, %v689_v48  ;;  %v691_v53 = vsel %vm2208_vm0, %v689_v48, %v687_v51  ;;  %vm2211_vm5 = vcmp.lt.s32.totalorder %v1591_v12, 1 }
 0x220   : > { %v692_v54 = vmax.f32 %v684_v49, %v690_v52  ;;  %v693_v57 = vmax.f32 %v685_v50, %v691_v53  ;;  %vm2212_vm0 = vmmov %vm2211_vm5 }
 0x222   : > { %v694_v59 = vsel %vm2209_vm7, %v692_v54, %v684_v49  ;;  %v695_v60 = vsel %vm2210_vm6, %v693_v57, %v685_v50  ;;  %vm2213_vm6 = vcmp.lt.s32.totalorder %v1591_v12, 127 }
 0x223   : > { %698 = vrot.lane.b32.xlu1 %v695_v60, %s1271_s26  ;;  %696 = vrot.lane.b32.xlu0 %v694_v59, %s1271_s26  ;;  %vm2214_vm7 = vmmov %vm2213_vm6 }
 0x227   : > { %708 = vrot.lane.b32.xlu1 %v695_v60, %s1272_s23  ;;  %706 = vrot.lane.b32.xlu0 %v694_v59, %s1272_s23 }
 0x22b   : > { %718 = vrot.lane.b32.xlu1 %v695_v60, %s1273_s9  ;;  %716 = vrot.lane.b32.xlu0 %v694_v59, %s1273_s9 }
 0x22f   : > { %728 = vrot.lane.b32.xlu1 %v695_v60, %s1274_s19  ;;  %726 = vrot.lane.b32.xlu0 %v694_v59, %s1274_s19 }
 0x295   : > { %v699_v61 = vpop.permute.xlu1 %698  ;;  %v697_v62 = vpop.permute.xlu0 %696 }
 0x296   : > { %v700_v63 = vsel %vm2211_vm5, %v697_v62, %v699_v61  ;;  %v701_v58 = vsel %vm2212_vm0, %v699_v61, %v697_v62  ;;  %vm2215_vm5 = vcmp.lt.s32.totalorder %v1591_v12, 2 }
 0x297   : > { %v702_v1 = vmax.f32 %v694_v59, %v701_v58  ;;  %v703_v10 = vmax.f32 %v695_v60, %v700_v63  ;;  %vm2216_vm0 = vmmov %vm2215_vm5 }
 0x299   : > { %v709_v14 = vpop.permute.xlu1 %708  ;;  %v704_v15 = vsel %vm1819_vm15, %v702_v1, %v694_v59  ;;  %v705_v2 = vsel %vm1823_vm1, %v703_v10, %v695_v60  ;;  %v707_v16 = vpop.permute.xlu0 %706 }
 0x29a   : > { %v710_v17 = vsel %vm2213_vm6, %v707_v16, %v709_v14  ;;  %v711_v18 = vsel %vm2214_vm7, %v709_v14, %v707_v16  ;;  %vm2217_vm7 = vcmp.lt.s32.totalorder %v1591_v12, 126 }
 0x29b   : > { %v712_v21 = vmax.f32 %v704_v15, %v710_v17  ;;  %v713_v22 = vmax.f32 %v705_v2, %v711_v18  ;;  %vm2218_vm6 = vmmov %vm2217_vm7 }
 0x29d   : > { %v719_v23 = vpop.permute.xlu1 %718  ;;  %v714_v24 = vsel %vm1844_vm9, %v712_v21, %v704_v15  ;;  %v715_v27 = vsel %vm1848_vm12, %v713_v22, %v705_v2  ;;  %v717_v28 = vpop.permute.xlu0 %716 }
 0x29e   : > { %v720_v29 = vsel %vm2215_vm5, %v717_v28, %v719_v23  ;;  %v721_v30 = vsel %vm2216_vm0, %v719_v23, %v717_v28  ;;  %vm2219_vm5 = vcmp.lt.s32.totalorder %v1591_v12, 16 }
 0x29f   : > { %v722_v31 = vmax.f32 %v714_v24, %v721_v30  ;;  %v723_v32 = vmax.f32 %v715_v27, %v720_v29  ;;  %vm2220_vm0 = vmmov %vm2219_vm5 }
 0x2a1   : > { %v729_v33 = vpop.permute.xlu1 %728  ;;  %v724_v34 = vsel %vm1864_vm14, %v722_v31, %v714_v24  ;;  %v725_v35 = vsel %vm1868_vm3, %v723_v32, %v715_v27  ;;  %v727_v36 = vpop.permute.xlu0 %726 }
 0x2a2   : > { %v730_v37 = vsel %vm2217_vm7, %v727_v36, %v729_v33  ;;  %v731_v7 = vsel %vm2218_vm6, %v729_v33, %v727_v36  ;;  %vm2221_vm7 = vcmp.lt.s32.totalorder %v1591_v12, 112 }
 0x2a3   : > { %v732_v39 = vmax.f32 %v724_v34, %v730_v37  ;;  %v733_v4 = vmax.f32 %v725_v35, %v731_v7  ;;  %vm2222_vm6 = vmmov %vm2221_vm7 }
 0x2a5   : > { %v734_v11 = vsel %vm1880_vm2, %v732_v39, %v724_v34  ;;  %v735_v40 = vsel %vm1884_vm8, %v733_v4, %v725_v35 }
 0x2a6   : > { %v738_v42 = vcombine.low %v734_v11, %v735_v40  ;;  %744 = vrot.lane.b32.xlu1 %v735_v40, %s1268_s7  ;;  %742 = vrot.lane.b32.xlu0 %v734_v11, %s1268_s7 }
 0x2a8   : > { %982 = vst [vmem:[%s1496_s18 + $0x8] sm:$0xff] %v738_v42 }
 0x2aa   : > { %754 = vrot.lane.b32.xlu1 %v735_v40, %s1267_s20  ;;  %752 = vrot.lane.b32.xlu0 %v734_v11, %s1267_s20  ;;  %s1176_s20 = sshll.u32 %s1276_s5, 4  ;;  %s1177_s20 = int_to_ptr.vmem [resolvable:$false] %s1176_s20 }
 0x2ab   : > { %s1178_s7 = scalar_lea.vmem %s1177_s20, 1024  ;;  %p1179_p5 = scmp.lt.s32.totalorder %s2061_s30, %s1177_s20 }
 0x2ac   : > { %p1180_p10 = scmp.lt.s32.totalorder %s1178_s7, %s1172_s4 }
 0x2ae   : > { %764 = vrot.lane.b32.xlu1 %v735_v40, %s1269_s8  ;;  %762 = vrot.lane.b32.xlu0 %v734_v11, %s1269_s8  ;;  %p1181_p13 = por %p1180_p10, %p1179_p5 }
 0x2b0   : > { %p1182_p9 = pnand %p1181_p13, %p1175_p0 }
 0x2b2   : > { %774 = vrot.lane.b32.xlu1 %v735_v40, %s1270_s10  ;;  %772 = vrot.lane.b32.xlu0 %v734_v11, %s1270_s10 }
 0x318   : > { %v745_v43 = vpop.permute.xlu1 %744  ;;  %v743_v45 = vpop.permute.xlu0 %742 }
 0x319   : > { %v746_v46 = vsel %vm2219_vm5, %v743_v45, %v745_v43  ;;  %v747_v47 = vsel %vm2220_vm0, %v745_v43, %v743_v45  ;;  %vm2223_vm5 = vnez %v2156_v41  ;;  %vm2224_vm0 = vnez %v2158_v44 }
 0x31a   : > { %v748_v48 = vmax.f32 %v734_v11, %v747_v47  ;;  %v749_v49 = vmax.f32 %v735_v40, %v746_v46 }
 0x31c   : > { %v755_v50 = vpop.permute.xlu1 %754  ;;  %v750_v51 = vsel %vm1652_vm10, %v748_v48, %v734_v11  ;;  %v751_v52 = vsel %vm1656_vm11, %v749_v49, %v735_v40  ;;  %v753_v53 = vpop.permute.xlu0 %752  ;;  %vm2225_vm10 = vcmp.lt.s32.totalorder %v1591_v12, 32 }
 0x31d   : > { %v756_v54 = vsel %vm2221_vm7, %v753_v53, %v755_v50  ;;  %v757_v57 = vsel %vm2222_vm6, %v755_v50, %v753_v53  ;;  %vm2226_vm11 = vmmov %vm2225_vm10  ;;  %vm2227_vm7 = vcmp.lt.s32.totalorder %v1591_v12, 96 }
 0x31e   : > { %v758_v59 = vmax.f32 %v750_v51, %v756_v54  ;;  %v759_v60 = vmax.f32 %v751_v52, %v757_v57  ;;  %vm2228_vm6 = vmmov %vm2227_vm7 }
 0x320   : > { %v765_v61 = vpop.permute.xlu1 %764  ;;  %v760_v62 = vsel %vm2223_vm5, %v758_v59, %v750_v51  ;;  %v761_v25 = vsel %vm2224_vm0, %v759_v60, %v751_v52  ;;  %v763_v63 = vpop.permute.xlu0 %762  ;;  %vm2229_vm5 = vnez %v2164_v3  ;;  %vm2230_vm0 = vnez %v2166_v5 }
 0x321   : > { %v766_v26 = vsel %vm2225_vm10, %v763_v63, %v765_v61  ;;  %v767_v58 = vsel %vm2226_vm11, %v765_v61, %v763_v63  ;;  %vm2233_vm10 = vcmp.lt.s32.totalorder %v1591_v12, 127 }
 0x322   : > { %v768_v1 = vmax.f32 %v760_v62, %v767_v58  ;;  %v769_v10 = vmax.f32 %v761_v25, %v766_v26  ;;  %vm2234_vm11 = vmmov %vm2233_vm10 }
 0x324   : > { %v775_v14 = vpop.permute.xlu1 %774  ;;  %v770_v15 = vsel %vm2205_vm13, %v768_v1, %v760_v62  ;;  %v771_v41 = vsel %vm2206_vm4, %v769_v10, %v761_v25  ;;  %v773_v2 = vpop.permute.xlu0 %772  ;;  %vm2231_vm13 = vcmp.lt.s32.totalorder %v1591_v12, 1 }
 0x325   : > { %v776_v44 = vsel %vm2227_vm7, %v773_v2, %v775_v14  ;;  %v777_v16 = vsel %vm2228_vm6, %v775_v14, %v773_v2  ;;  %vm2232_vm4 = vmmov %vm2231_vm13 }
 0x326   : > { %v778_v17 = vmax.f32 %v770_v15, %v776_v44  ;;  %v779_v18 = vmax.f32 %v771_v41, %v777_v16 }
 0x328   : > { %v780_v21 = vsel %vm2229_vm5, %v778_v17, %v770_v15  ;;  %v781_v22 = vsel %vm2230_vm0, %v779_v18, %v771_v41 }
 0x329   : > { %784 = vrot.lane.b32.xlu1 %v781_v22, %s1271_s26  ;;  %782 = vrot.lane.b32.xlu0 %v780_v21, %s1271_s26 }
 0x32d   : > { %794 = vrot.lane.b32.xlu1 %v781_v22, %s1272_s23  ;;  %792 = vrot.lane.b32.xlu0 %v780_v21, %s1272_s23 }
 0x331   : > { %804 = vrot.lane.b32.xlu1 %v781_v22, %s1273_s9  ;;  %802 = vrot.lane.b32.xlu0 %v780_v21, %s1273_s9 }
 0x335   : > { %814 = vrot.lane.b32.xlu1 %v781_v22, %s1274_s19  ;;  %812 = vrot.lane.b32.xlu0 %v780_v21, %s1274_s19 }
 0x39b   : > { %v785_v55 = vpop.permute.xlu1 %784  ;;  %v783_v56 = vpop.permute.xlu0 %782 }
 0x39c   : > { %v786_v3 = vsel %vm2231_vm13, %v783_v56, %v785_v55  ;;  %v787_v5 = vsel %vm2232_vm4, %v785_v55, %v783_v56 }
 0x39d   : > { %v788_v23 = vmax.f32 %v780_v21, %v787_v5  ;;  %v789_v24 = vmax.f32 %v781_v22, %v786_v3 }
 0x39f   : > { %v795_v27 = vpop.permute.xlu1 %794  ;;  %v790_v28 = vsel %vm1819_vm15, %v788_v23, %v780_v21  ;;  %v791_v29 = vsel %vm1823_vm1, %v789_v24, %v781_v22  ;;  %v793_v30 = vpop.permute.xlu0 %792  ;;  %vm2235_vm15 = vcmp.lt.s32.totalorder %v1591_v12, 2 }
 0x3a0   : > { %v796_v31 = vsel %vm2233_vm10, %v793_v30, %v795_v27  ;;  %v797_v32 = vsel %vm2234_vm11, %v795_v27, %v793_v30  ;;  %vm2236_vm1 = vmmov %vm2235_vm15 }
 0x3a1   : > { %v798_v33 = vmax.f32 %v790_v28, %v796_v31  ;;  %v799_v34 = vmax.f32 %v791_v29, %v797_v32 }
 0x3a3   : > { %v805_v35 = vpop.permute.xlu1 %804  ;;  %v800_v36 = vsel %vm1844_vm9, %v798_v33, %v790_v28  ;;  %v801_v38 = vsel %vm1848_vm12, %v799_v34, %v791_v29  ;;  %v803_v6 = vpop.permute.xlu0 %802  ;;  %vm2237_vm9 = vcmp.lt.s32.totalorder %v1591_v12, 126 }
 0x3a4   : > { %v806_v37 = vsel %vm2235_vm15, %v803_v6, %v805_v35  ;;  %v807_v7 = vsel %vm2236_vm1, %v805_v35, %v803_v6  ;;  %vm2238_vm12 = vmmov %vm2237_vm9 }
 0x3a5   : > { %v808_v39 = vmax.f32 %v800_v36, %v807_v7  ;;  %v809_v4 = vmax.f32 %v801_v38, %v806_v37 }
 0x3a7   : > { %v815_v11 = vpop.permute.xlu1 %814  ;;  %v810_v40 = vsel %vm1864_vm14, %v808_v39, %v800_v36  ;;  %v811_v8 = vsel %vm1868_vm3, %v809_v4, %v801_v38  ;;  %v813_v13 = vpop.permute.xlu0 %812 }
 0x3a8   : > { %v816_v42 = vsel %vm2237_vm9, %v813_v13, %v815_v11  ;;  %v817_v43 = vsel %vm2238_vm12, %v815_v11, %v813_v13 }
 0x3a9   : > { %v818_v45 = vmax.f32 %v810_v40, %v816_v42  ;;  %v819_v46 = vmax.f32 %v811_v8, %v817_v43 }
 0x3ab   : > { %v820_v9 = vsel %vm1880_vm2, %v818_v45, %v810_v40  ;;  %v821_v47 = vsel %vm1884_vm8, %v819_v46, %v811_v8 }
 0x3ac   : > { %v824_v12 = vcombine.low %v820_v9, %v821_v47 }
 0x3ae   : > { %826 = vst [vmem:[%s1496_s18] sm:$0xff] %v824_v12 }
 0x3af   : > { %1185 = shalt.err (!%p1182_p9)
}
 0x3b0   : > { %s1186_s18 = scalar_lea.hbm %s2059_s24, 512  ;;  %s1190_s26 = scalar_lea.hbm %s2114_s3, 1024 }
 0x3b1   : > { %p1187_p7 = scmp.ne.s32.totalorder %s2059_s24, %s1186_s18  ;;  %p1191_p1 = scmp.lt.u32.totalorder %s2059_s24, %s2114_s3 }
 0x3b2   : > { %p1192_p4 = scmp.lt.u32.totalorder %s1190_s26, %s1186_s18  ;;  %p1194_p6 = scmp.lt.u32.totalorder %s1186_s18, %s2059_s24 }
 0x3b3   : > { %p1188_p3 = pnand %p1187_p7, %p1421_p8 }
 0x3b4   : > { %p1193_p11 = por %p1192_p4, %p1191_p1 }
 0x3b5   : > { %p1189_p2 = pneg %p1188_p3 }
 0x3b6   : > { %p1195_p12 = por %p1194_p6, %p1193_p11 }
 0x3b8   : > { %p1196_p0 = pnand %p1195_p12, %p1189_p2 }
 0x3ba   : > { %1199 = shalt.err (!%p1196_p0)
}
 0x3bb   : > { %s1277_s19 = smov 128   ;;  %s1278_s25 = smov 8  }
 0x3bc   : > { %1001 = dma.vmem_to_hbm [thread:$0]  (%p1421_p8), %s2061_s30, 512, %s2059_s24, %s830_s15, %s1277_s19, %s1277_s19, %s1278_s25  }
 0x3bd PF: > { %s860_s29 = sand.u32 1, %s1242_s12   ;;  %p2239_p5 = scmp.ne.s32.totalorder %s2139_s21, 0 }
 0x3be   : > { %p2240_p10 = scmp.ge.s32.totalorder %s1262_s17, 2  ;;  %s861_s22 = scalar_lea.sflag [#allocation4], %s860_s29 }
 0x3c0   : > { %p1015_p13 = pnand %p2240_p10, %p2239_p5 }
 0x3c2   : > { %1237 = dma.done.wait (!%p1015_p13), %s861_s22, 512  }
 0x3c3   : > { %1239 = vsyncadd (!%p1015_p13), %s861_s22, 4294966784  ;;  %s18_s17 = sadd.s32 1, %s1262_s17   ;;  %s2241_s12 = smov %s1246_s13 }
 0x3c4   : > { %p15_p9 = scmp.ge.s32.totalorder %s18_s17, 4   ;;  %s2242_s13 = smov %s1250_s14 }
 0x3c5   : > { %s2243_s14 = smov %s1431_s11  ;;  %s2244_s15 = smov %s1258_s16 }
 0x3c6   : > { %s2245_s16 = smov %s2247_s6  ;;  %17 = sbr.rel (!%p15_p9) target bundleno = 6 (0x6), region = 87 }
 0x3cd   :  { %866 = vsyncpa [#allocation3], 1 }
 0x3ce   :  { %868 = vsyncpa [#allocation3 + $0x1], 1 }
 0x3cf   :  { %869 = vsyncpa [#allocation6], 1 }
 0x3d0   :  { %870 = vsyncpa [#allocation4], 1 }
 0x3d1   :  { %872 = vsyncpa [#allocation4 + $0x1], 1 }

</bundles_post_ra>
